<compile_context>
chip_gen: v7x
topology: tpu7x:2x2x1
jax: 0.10.0
libtpu: 0.0.40
codegen_flags: <defaults>
</compile_context>

<pallas_src>
import functools

import jax
import jax.numpy as jnp
from jax import lax
from jax.experimental import pallas as pl
from jax.experimental.pallas import tpu as pltpu


def _bottleneck_kernel(x_ref, halo_ref, w1_ref, b1_ref, w2_ref, b2_ref,
                       w3_ref, b3_ref, o_ref, pad_ref, *, TH, W, Cmid):
    """One (batch, row-tile) per grid step.  Fuses:
         1x1 conv (BN1 folded) + bias + ReLU              (tile rows + halo rows)
      -> 3x3 conv (pad=1, stride=1) as 9 accumulated MXU matmuls + bias + ReLU
      -> 1x1 expand conv + bias -> + identity -> ReLU
    """
    r = pl.program_id(1)
    n_r = pl.num_programs(1)

    x = x_ref[0]                                           # (TH*W, Cin) bf16

    # ---- proj_conv (1x1) + bn1 (scale folded into w1) + relu ----
    def conv1(v):                                          # v: (rows, Cin)
        h = jnp.dot(v, w1_ref[...], preferred_element_type=jnp.float32)
        return jnp.maximum(h + b1_ref[...], 0.0)

    h1_main = conv1(x)                                     # (TH*W, Cmid) f32

    # Halo rows (row above / below this tile).  At image boundaries the 3x3
    # padding must be zero *after* 1x1+BN+ReLU, so mask the halo h1 instead of
    # zero-padding x.  The host-side clamped gather values are never used there.
    top_keep = jnp.where(r > 0, 1.0, 0.0)
    bot_keep = jnp.where(r < n_r - 1, 1.0, 0.0)
    h1_top = conv1(halo_ref[0, 0]) * top_keep              # (W, Cmid)
    h1_bot = conv1(halo_ref[0, 1]) * bot_keep              # (W, Cmid)

    # ---- write the (TH+2, W+2) zero-padded h1 tile (fully overwritten each
    #      step -> no cross-step scratch state, no halo-init bookkeeping) ----
    pdt = pad_ref.dtype
    pad_ref[0:1, 1:W + 1, :] = h1_top[None].astype(pdt)
    pad_ref[1:TH + 1, 1:W + 1, :] = h1_main.reshape(TH, W, Cmid).astype(pdt)
    pad_ref[TH + 1:TH + 2, 1:W + 1, :] = h1_bot[None].astype(pdt)
    zcol = jnp.zeros((TH + 2, 1, Cmid), pdt)               # only 2*(TH+2) narrow stores
    pad_ref[:, 0:1, :] = zcol
    pad_ref[:, W + 1:W + 2, :] = zcol

    # ---- conv3x3 (pad=1, stride=1) + bn2 + relu :
    #      9 accumulated matmuls straight off the padded tile (no im2col buffer) ----
    acc = None
    for t in range(9):                                     # static unrolled taps
        di, dj = t // 3, t % 3
        tap = pad_ref[di:di + TH, dj:dj + W, :]            # (TH, W, Cmid) bf16
        p = jnp.dot(tap.reshape(TH * W, Cmid), w2_ref[t],
                    preferred_element_type=jnp.float32)
        acc = p if acc is None else acc + p
    h2 = jnp.maximum(acc + b2_ref[...], 0.0)               # (TH*W, Cmid) f32

    # ---- expand_conv (1x1) + bn3 ----
    h3 = jnp.dot(h2.astype(w3_ref.dtype), w3_ref[...],
                 preferred_element_type=jnp.float32) + b3_ref[...]   # (TH*W, Cexp)

    # ---- residual add (downsample is None -> identity) + relu ----
    o_ref[0] = jnp.maximum(h3 + x.astype(jnp.float32), 0.0).astype(o_ref.dtype)


def _fold_bn(gamma, beta, mean, var, eps):
    scale = gamma / jnp.sqrt(var + eps)
    bias = beta - mean * scale
    return scale.astype(jnp.float32), bias.astype(jnp.float32)


def _pick_row_tile(H, W, target=8):
    """Largest row-tile <= target that divides H and keeps TH*W sublane-aligned."""
    for th in range(min(target, H), 0, -1):
        if H % th == 0 and (th * W) % 8 == 0:
            return th
    return H


def bottleneck_forward(x_nchw, params, *, stride=1, eps=1e-5,
                       out_dtype=jnp.bfloat16, row_tile=None):
    assert stride == 1, "kernel implements the stride=1 / downsample=None path"

    N, Cin, H, W = x_nchw.shape
    w1 = params["w1"]          # (Cmid, Cin, 1, 1)   torch OIHW
    w2 = params["w2"]          # (Cmid, Cmid, 3, 3)
    w3 = params["w3"]          # (Cexp, Cmid, 1, 1)
    Cmid = w1.shape[0]
    Cexp = w3.shape[0]
    assert Cexp == Cin, "identity residual requires in_channels == out_channels*expansion"

    s1, b1 = _fold_bn(params["g1"], params["be1"], params["m1"], params["v1"], eps)
    s2, b2 = _fold_bn(params["g2"], params["be2"], params["m2"], params["v2"], eps)
    s3, b3 = _fold_bn(params["g3"], params["be3"], params["m3"], params["v3"], eps)

    # Fold BN scales into the output-channel columns of each weight; cast the
    # MXU operands to bf16 (f32 accumulation happens inside the kernel).
    w1_k = (jnp.transpose(w1[:, :, 0, 0], (1, 0)) * s1[None, :]).astype(jnp.bfloat16)   # (Cin, Cmid)
    w2_k = (jnp.transpose(w2, (2, 3, 1, 0)).reshape(9, Cmid, Cmid)
            * s2[None, None, :]).astype(jnp.bfloat16)                                   # (9, Cmid, Cmid)
    w3_k = (jnp.transpose(w3[:, :, 0, 0], (1, 0)) * s3[None, :]).astype(jnp.bfloat16)   # (Cmid, Cexp)

    TH = row_tile if row_tile is not None else _pick_row_tile(H, W)
    assert H % TH == 0 and (TH == H or (TH * W) % 8 == 0)
    R = H // TH

    # Channels-last activations: lane-dense DMA/stores, every conv an MXU matmul.
    x_nhwc = jnp.transpose(x_nchw, (0, 2, 3, 1)).astype(jnp.bfloat16)      # (N,H,W,Cin)
    x_flat = x_nhwc.reshape(N, H * W, Cin)

    # Per-tile halo rows (row above / below each tile); boundary clamps are
    # never used because the kernel zeroes those h1 halo rows.
    tiles = jnp.arange(R)
    halo_idx = jnp.stack([jnp.clip(tiles * TH - 1, 0, H - 1),
                          jnp.clip(tiles * TH + TH, 0, H - 1)], axis=1)    # (R, 2)
    x_halo = x_nhwc[:, halo_idx].reshape(N, R * 2, W, Cin)                 # (N, R*2, W, Cin)

    vec = lambda v: v.reshape(1, -1)
    kernel = functools.partial(_bottleneck_kernel, TH=TH, W=W, Cmid=Cmid)

    # --- declared VMEM budget (feedback: fail loudly instead of silently degrading) ---
    bs = 2                                                  # bf16 bytes
    ob = int(jnp.dtype(out_dtype).itemsize)
    x_blk = TH * W * Cin * bs
    halo_blk = 2 * W * Cin * bs
    o_blk = TH * W * Cexp * ob
    w_bytes = (Cin * Cmid + 9 * Cmid * Cmid + Cmid * Cexp) * bs + (2 * Cmid + Cexp) * 4
    pad_bytes = (TH + 2) * (W + 2) * Cmid * bs
    vmem_est = 2 * (x_blk + halo_blk + o_blk + w_bytes) + pad_bytes        # double-buffered streams
    vmem_limit = int(min(max(2 * vmem_est + (8 << 20), 32 << 20), 120 << 20))

    flops = 2 * N * H * W * (Cin * Cmid + 9 * Cmid * Cmid + Cmid * Cexp)
    bytes_accessed = (N * H * W * Cin * bs + N * R * 2 * W * Cin * bs
                      + N * H * W * Cexp * ob + w_bytes)

    out_flat = pl.pallas_call(
        kernel,
        out_shape=jax.ShapeDtypeStruct((N, H * W, Cexp), out_dtype),
        grid_spec=pltpu.PrefetchScalarGridSpec(
            num_scalar_prefetch=0,
            grid=(N, R),
            in_specs=[
                pl.BlockSpec((1, TH * W, Cin), lambda b, r: (b, r, 0)),        # x row-tile
                pl.BlockSpec((1, 2, W, Cin), lambda b, r: (b, r, 0, 0)),       # halo rows
                pl.BlockSpec((Cin, Cmid), lambda b, r: (0, 0)),                # w1 (BN folded)
                pl.BlockSpec((1, Cmid), lambda b, r: (0, 0)),                  # bn1 bias
                pl.BlockSpec((9, Cmid, Cmid), lambda b, r: (0, 0, 0)),         # w2 taps
                pl.BlockSpec((1, Cmid), lambda b, r: (0, 0)),                  # bn2 bias
                pl.BlockSpec((Cmid, Cexp), lambda b, r: (0, 0)),               # w3
                pl.BlockSpec((1, Cexp), lambda b, r: (0, 0)),                  # bn3 bias
            ],
            out_specs=pl.BlockSpec((1, TH * W, Cexp), lambda b, r: (b, r, 0)),
            scratch_shapes=[
                pltpu.VMEM((TH + 2, W + 2, Cmid), jnp.bfloat16),               # padded h1 tile
            ],
        ),
        compiler_params=pltpu.CompilerParams(
            # Batch and row-tile steps are fully independent -> shardable across TCs.
            dimension_semantics=("parallel", "parallel"),
            vmem_limit_bytes=vmem_limit),
        cost_estimate=pl.CostEstimate(flops=flops, transcendentals=0,
                                      bytes_accessed=bytes_accessed),
    )(x_flat, x_halo, w1_k, vec(b1), w2_k, vec(b2), w3_k, vec(b3))

    return jnp.transpose(out_flat.reshape(N, H, W, Cexp), (0, 3, 1, 2))


def bottleneck_reference(x_nchw, params, *, stride=1, eps=1e-5):
    """Pure-JAX (lax.conv) reference mirroring the PyTorch forward (eval-mode BN)."""
    dn = ("NCHW", "OIHW", "NCHW")

    def bn(h, g, be, m, v):
        sc = g / jnp.sqrt(v + eps)
        return h * sc[None, :, None, None] + (be - m * sc)[None, :, None, None]

    h = lax.conv_general_dilated(x_nchw, params["w1"], (1, 1), "VALID",
                                 dimension_numbers=dn)
    h = jax.nn.relu(bn(h, params["g1"], params["be1"], params["m1"], params["v1"]))
    h = lax.conv_general_dilated(h, params["w2"], (stride, stride),
                                 [(1, 1), (1, 1)], dimension_numbers=dn)
    h = jax.nn.relu(bn(h, params["g2"], params["be2"], params["m2"], params["v2"]))
    h = lax.conv_general_dilated(h, params["w3"], (1, 1), "VALID",
                                 dimension_numbers=dn)
    h = bn(h, params["g3"], params["be3"], params["m3"], params["v3"])
    return jax.nn.relu(h + x_nchw)


def make_params(key, in_channels, out_channels, expansion):
    Cexp = out_channels * expansion
    ks = jax.random.split(key, 12)
    u = lambda k, s: (jax.random.uniform(k, s, jnp.float32) - 0.5) * 0.2
    p = {
        "w1": u(ks[0], (out_channels, in_channels, 1, 1)),
        "w2": u(ks[1], (out_channels, out_channels, 3, 3)),
        "w3": u(ks[2], (Cexp, out_channels, 1, 1)),
        # BN1
        "g1": 1.0 + u(ks[3], (out_channels,)), "be1": u(ks[4], (out_channels,)),
        "m1": u(ks[5], (out_channels,)),
        "v1": 1.0 + jax.random.uniform(ks[6], (out_channels,), jnp.float32) * 0.1,
        # BN2
        "g2": 1.0 + u(ks[7], (out_channels,)), "be2": u(ks[8], (out_channels,)),
        "m2": u(ks[9], (out_channels,)),
        "v2": 1.0 + jax.random.uniform(ks[10], (out_channels,), jnp.float32) * 0.1,
        # BN3
        "g3": jnp.linspace(0.9, 1.1, Cexp, dtype=jnp.float32),
        "be3": jnp.linspace(-0.05, 0.05, Cexp, dtype=jnp.float32),
        "m3": jnp.linspace(-0.02, 0.02, Cexp, dtype=jnp.float32),
        "v3": 1.0 + jax.random.uniform(ks[11], (Cexp,), jnp.float32) * 0.1,
    }
    return p


if __name__ == "__main__":
    # Small, downsample=None configuration: in_channels == out_channels * expansion.
    N, in_channels, H, W = 2, 64, 16, 16
    out_channels, expansion, stride = 16, 4, 1

    key = jax.random.PRNGKey(0)
    kx, kp = jax.random.split(key)
    x = jax.random.normal(kx, (N, in_channels, H, W), jnp.float32)
    params = make_params(kp, in_channels, out_channels, expansion)

    out = jax.block_until_ready(bottleneck_forward(x, params, stride=stride))
    ref = jax.block_until_ready(bottleneck_reference(x, params, stride=stride))

    assert out.shape == ref.shape == (N, in_channels, H, W)
    out_f32 = out.astype(jnp.float32)
    max_err = float(jnp.max(jnp.abs(out_f32 - ref)))
    # bf16 streamed input / MXU operands / bf16 output (f32 accumulation) ->
    # tolerance relaxed vs a pure-f32 path.
    assert jnp.allclose(out_f32, ref, atol=1e-1, rtol=1e-1), max_err

    print("KERNEL_OK")
</pallas_src>

<mosaic_0001>
module attributes {stable_mosaic.version = 11 : i64} {
  func.func @_bottleneck_kernel(%arg0: i32, %arg1: i32, %arg2: memref<1x128x64xbf16, #tpu.memory_space<vmem>>, %arg3: memref<1x2x16x64xbf16, #tpu.memory_space<vmem>>, %arg4: memref<64x16xbf16, #tpu.memory_space<vmem>>, %arg5: memref<1x16xf32, #tpu.memory_space<vmem>>, %arg6: memref<9x16x16xbf16, #tpu.memory_space<vmem>>, %arg7: memref<1x16xf32, #tpu.memory_space<vmem>>, %arg8: memref<16x64xbf16, #tpu.memory_space<vmem>>, %arg9: memref<1x64xf32, #tpu.memory_space<vmem>>, %arg10: memref<1x128x64xbf16, #tpu.memory_space<vmem>>, %arg11: memref<10x18x16xbf16, #tpu.memory_space<vmem>>) attributes {dimension_semantics = [#tpu.dimension_semantics<parallel>, #tpu.dimension_semantics<parallel>], iteration_bounds = array<i64: 2, 2>, scalar_prefetch = 0 : i64, scratch_operands = 1 : i64, tpu.core_type = #tpu.core_type<tc>, window_params = [{transform_indices = @transform_0, window_bounds = array<i64: 1, 128, 64>}, {transform_indices = @transform_1, window_bounds = array<i64: 1, 2, 16, 64>}, {pipeline_mode = #tpu.pipeline_mode<synchronous>, transform_indices = @transform_2, window_bounds = array<i64: 64, 16>}, {pipeline_mode = #tpu.pipeline_mode<synchronous>, transform_indices = @transform_3, window_bounds = array<i64: 1, 16>}, {pipeline_mode = #tpu.pipeline_mode<synchronous>, transform_indices = @transform_4, window_bounds = array<i64: 9, 16, 16>}, {pipeline_mode = #tpu.pipeline_mode<synchronous>, transform_indices = @transform_5, window_bounds = array<i64: 1, 16>}, {pipeline_mode = #tpu.pipeline_mode<synchronous>, transform_indices = @transform_6, window_bounds = array<i64: 16, 64>}, {pipeline_mode = #tpu.pipeline_mode<synchronous>, transform_indices = @transform_7, window_bounds = array<i64: 1, 64>}, {transform_indices = @transform_8, window_bounds = array<i64: 1, 128, 64>}]} {
    %c0 = arith.constant 0 : index
    %c0_0 = arith.constant 0 : index
    %c0_1 = arith.constant 0 : index
    %0 = vector.load %arg2[%c0, %c0_0, %c0_1] : memref<1x128x64xbf16, #tpu.memory_space<vmem>>, vector<1x128x64xbf16>
    %1 = vector.shape_cast %0 : vector<1x128x64xbf16> to vector<128x64xbf16>
    %c0_2 = arith.constant 0 : index
    %c0_3 = arith.constant 0 : index
    %2 = vector.load %arg4[%c0_2, %c0_3] : memref<64x16xbf16, #tpu.memory_space<vmem>>, vector<64x16xbf16>
    %cst = arith.constant dense<0.000000e+00> : vector<128x16xf32>
    %3 = tpu.matmul %1, %2, %cst {dimension_numbers = #tpu.dot_dimension_numbers<[1], [0], [0], [1], [0, 0, 1, 1], [], []>} : vector<128x64xbf16>, vector<64x16xbf16>, vector<128x16xf32> -> vector<128x16xf32>
    %c0_4 = arith.constant 0 : index
    %c0_5 = arith.constant 0 : index
    %4 = vector.load %arg5[%c0_4, %c0_5] : memref<1x16xf32, #tpu.memory_space<vmem>>, vector<1x16xf32>
    %5 = vector.broadcast %4 : vector<1x16xf32> to vector<128x16xf32>
    %6 = arith.addf %3, %5 : vector<128x16xf32>
    %cst_6 = arith.constant 0.000000e+00 : f32
    %7 = vector.broadcast %cst_6 : f32 to vector<128x16xf32>
    %8 = arith.maximumf %6, %7 : vector<128x16xf32>
    %c0_i32 = arith.constant 0 : i32
    %9 = arith.cmpi sgt, %arg1, %c0_i32 : i32
    %cst_7 = arith.constant 1.000000e+00 : f32
    %cst_8 = arith.constant 0.000000e+00 : f32
    %10 = arith.select %9, %cst_7, %cst_8 : f32
    %c1_i32 = arith.constant 1 : i32
    %11 = arith.cmpi slt, %arg1, %c1_i32 : i32
    %cst_9 = arith.constant 1.000000e+00 : f32
    %cst_10 = arith.constant 0.000000e+00 : f32
    %12 = arith.select %11, %cst_9, %cst_10 : f32
    %c0_11 = arith.constant 0 : index
    %c0_12 = arith.constant 0 : index
    %c0_13 = arith.constant 0 : index
    %c0_14 = arith.constant 0 : index
    %13 = vector.load %arg3[%c0_11, %c0_12, %c0_13, %c0_14] : memref<1x2x16x64xbf16, #tpu.memory_space<vmem>>, vector<1x1x16x64xbf16>
    %14 = vector.shape_cast %13 : vector<1x1x16x64xbf16> to vector<16x64xbf16>
    %c0_15 = arith.constant 0 : index
    %c0_16 = arith.constant 0 : index
    %15 = vector.load %arg4[%c0_15, %c0_16] : memref<64x16xbf16, #tpu.memory_space<vmem>>, vector<64x16xbf16>
    %cst_17 = arith.constant dense<0.000000e+00> : vector<16x16xf32>
    %16 = tpu.matmul %14, %15, %cst_17 {dimension_numbers = #tpu.dot_dimension_numbers<[1], [0], [0], [1], [0, 0, 1, 1], [], []>} : vector<16x64xbf16>, vector<64x16xbf16>, vector<16x16xf32> -> vector<16x16xf32>
    %c0_18 = arith.constant 0 : index
    %c0_19 = arith.constant 0 : index
    %17 = vector.load %arg5[%c0_18, %c0_19] : memref<1x16xf32, #tpu.memory_space<vmem>>, vector<1x16xf32>
    %18 = vector.broadcast %17 : vector<1x16xf32> to vector<16x16xf32>
    %19 = arith.addf %16, %18 : vector<16x16xf32>
    %cst_20 = arith.constant 0.000000e+00 : f32
    %20 = vector.broadcast %cst_20 : f32 to vector<16x16xf32>
    %21 = arith.maximumf %19, %20 : vector<16x16xf32>
    %22 = vector.broadcast %10 : f32 to vector<16x16xf32>
    %23 = arith.mulf %21, %22 : vector<16x16xf32>
    %c0_21 = arith.constant 0 : index
    %c1 = arith.constant 1 : index
    %c0_22 = arith.constant 0 : index
    %c0_23 = arith.constant 0 : index
    %24 = vector.load %arg3[%c0_21, %c1, %c0_22, %c0_23] : memref<1x2x16x64xbf16, #tpu.memory_space<vmem>>, vector<1x1x16x64xbf16>
    %25 = vector.shape_cast %24 : vector<1x1x16x64xbf16> to vector<16x64xbf16>
    %c0_24 = arith.constant 0 : index
    %c0_25 = arith.constant 0 : index
    %26 = vector.load %arg4[%c0_24, %c0_25] : memref<64x16xbf16, #tpu.memory_space<vmem>>, vector<64x16xbf16>
    %cst_26 = arith.constant dense<0.000000e+00> : vector<16x16xf32>
    %27 = tpu.matmul %25, %26, %cst_26 {dimension_numbers = #tpu.dot_dimension_numbers<[1], [0], [0], [1], [0, 0, 1, 1], [], []>} : vector<16x64xbf16>, vector<64x16xbf16>, vector<16x16xf32> -> vector<16x16xf32>
    %c0_27 = arith.constant 0 : index
    %c0_28 = arith.constant 0 : index
    %28 = vector.load %arg5[%c0_27, %c0_28] : memref<1x16xf32, #tpu.memory_space<vmem>>, vector<1x16xf32>
    %29 = vector.broadcast %28 : vector<1x16xf32> to vector<16x16xf32>
    %30 = arith.addf %27, %29 : vector<16x16xf32>
    %cst_29 = arith.constant 0.000000e+00 : f32
    %31 = vector.broadcast %cst_29 : f32 to vector<16x16xf32>
    %32 = arith.maximumf %30, %31 : vector<16x16xf32>
    %33 = vector.broadcast %12 : f32 to vector<16x16xf32>
    %34 = arith.mulf %32, %33 : vector<16x16xf32>
    %35 = vector.shape_cast %23 : vector<16x16xf32> to vector<1x16x16xf32>
    %36 = arith.truncf %35 : vector<1x16x16xf32> to vector<1x16x16xbf16>
    %c0_30 = arith.constant 0 : index
    %c1_31 = arith.constant 1 : index
    %c0_32 = arith.constant 0 : index
    %37 = vector.load %arg11[%c0_30, %c1_31, %c0_32] : memref<10x18x16xbf16, #tpu.memory_space<vmem>>, vector<1x16x16xbf16>
    tpu.vector_store %arg11[%c0_30, %c1_31, %c0_32], %36 {strides = array<i32>} : memref<10x18x16xbf16, #tpu.memory_space<vmem>>, vector<1x16x16xbf16>,
    %38 = vector.shape_cast %8 : vector<128x16xf32> to vector<8x16x16xf32>
    %39 = arith.truncf %38 : vector<8x16x16xf32> to vector<8x16x16xbf16>
    %c1_33 = arith.constant 1 : index
    %c1_34 = arith.constant 1 : index
    %c0_35 = arith.constant 0 : index
    %40 = vector.load %arg11[%c1_33, %c1_34, %c0_35] : memref<10x18x16xbf16, #tpu.memory_space<vmem>>, vector<8x16x16xbf16>
    tpu.vector_store %arg11[%c1_33, %c1_34, %c0_35], %39 {strides = array<i32>} : memref<10x18x16xbf16, #tpu.memory_space<vmem>>, vector<8x16x16xbf16>,
    %41 = vector.shape_cast %34 : vector<16x16xf32> to vector<1x16x16xf32>
    %42 = arith.truncf %41 : vector<1x16x16xf32> to vector<1x16x16xbf16>
    %c9 = arith.constant 9 : index
    %c1_36 = arith.constant 1 : index
    %c0_37 = arith.constant 0 : index
    %43 = vector.load %arg11[%c9, %c1_36, %c0_37] : memref<10x18x16xbf16, #tpu.memory_space<vmem>>, vector<1x16x16xbf16>
    tpu.vector_store %arg11[%c9, %c1_36, %c0_37], %42 {strides = array<i32>} : memref<10x18x16xbf16, #tpu.memory_space<vmem>>, vector<1x16x16xbf16>,
    %cst_38 = arith.constant 0.000000e+00 : bf16
    %44 = vector.broadcast %cst_38 : bf16 to vector<10x1x16xbf16>
    %c0_39 = arith.constant 0 : index
    %c0_40 = arith.constant 0 : index
    %c0_41 = arith.constant 0 : index
    %45 = vector.load %arg11[%c0_39, %c0_40, %c0_41] : memref<10x18x16xbf16, #tpu.memory_space<vmem>>, vector<10x1x16xbf16>
    tpu.vector_store %arg11[%c0_39, %c0_40, %c0_41], %44 {strides = array<i32>} : memref<10x18x16xbf16, #tpu.memory_space<vmem>>, vector<10x1x16xbf16>,
    %c0_42 = arith.constant 0 : index
    %c17 = arith.constant 17 : index
    %c0_43 = arith.constant 0 : index
    %46 = vector.load %arg11[%c0_42, %c17, %c0_43] : memref<10x18x16xbf16, #tpu.memory_space<vmem>>, vector<10x1x16xbf16>
    tpu.vector_store %arg11[%c0_42, %c17, %c0_43], %44 {strides = array<i32>} : memref<10x18x16xbf16, #tpu.memory_space<vmem>>, vector<10x1x16xbf16>,
    %c0_44 = arith.constant 0 : index
    %c0_45 = arith.constant 0 : index
    %c0_46 = arith.constant 0 : index
    %47 = vector.load %arg11[%c0_44, %c0_45, %c0_46] : memref<10x18x16xbf16, #tpu.memory_space<vmem>>, vector<8x16x16xbf16>
    %48 = vector.shape_cast %47 : vector<8x16x16xbf16> to vector<128x16xbf16>
    %c0_47 = arith.constant 0 : index
    %c0_48 = arith.constant 0 : index
    %c0_49 = arith.constant 0 : index
    %49 = vector.load %arg6[%c0_47, %c0_48, %c0_49] : memref<9x16x16xbf16, #tpu.memory_space<vmem>>, vector<1x16x16xbf16>
    %50 = vector.shape_cast %49 : vector<1x16x16xbf16> to vector<16x16xbf16>
    %cst_50 = arith.constant dense<0.000000e+00> : vector<128x16xf32>
    %51 = tpu.matmul %48, %50, %cst_50 {dimension_numbers = #tpu.dot_dimension_numbers<[1], [0], [0], [1], [0, 0, 1, 1], [], []>} : vector<128x16xbf16>, vector<16x16xbf16>, vector<128x16xf32> -> vector<128x16xf32>
    %c0_51 = arith.constant 0 : index
    %c1_52 = arith.constant 1 : index
    %c0_53 = arith.constant 0 : index
    %52 = vector.load %arg11[%c0_51, %c1_52, %c0_53] : memref<10x18x16xbf16, #tpu.memory_space<vmem>>, vector<8x16x16xbf16>
    %53 = vector.shape_cast %52 : vector<8x16x16xbf16> to vector<128x16xbf16>
    %c1_54 = arith.constant 1 : index
    %c0_55 = arith.constant 0 : index
    %c0_56 = arith.constant 0 : index
    %54 = vector.load %arg6[%c1_54, %c0_55, %c0_56] : memref<9x16x16xbf16, #tpu.memory_space<vmem>>, vector<1x16x16xbf16>
    %55 = vector.shape_cast %54 : vector<1x16x16xbf16> to vector<16x16xbf16>
    %cst_57 = arith.constant dense<0.000000e+00> : vector<128x16xf32>
    %56 = tpu.matmul %53, %55, %cst_57 {dimension_numbers = #tpu.dot_dimension_numbers<[1], [0], [0], [1], [0, 0, 1, 1], [], []>} : vector<128x16xbf16>, vector<16x16xbf16>, vector<128x16xf32> -> vector<128x16xf32>
    %57 = arith.addf %51, %56 : vector<128x16xf32>
    %c0_58 = arith.constant 0 : index
    %c2 = arith.constant 2 : index
    %c0_59 = arith.constant 0 : index
    %58 = vector.load %arg11[%c0_58, %c2, %c0_59] : memref<10x18x16xbf16, #tpu.memory_space<vmem>>, vector<8x16x16xbf16>
    %59 = vector.shape_cast %58 : vector<8x16x16xbf16> to vector<128x16xbf16>
    %c2_60 = arith.constant 2 : index
    %c0_61 = arith.constant 0 : index
    %c0_62 = arith.constant 0 : index
    %60 = vector.load %arg6[%c2_60, %c0_61, %c0_62] : memref<9x16x16xbf16, #tpu.memory_space<vmem>>, vector<1x16x16xbf16>
    %61 = vector.shape_cast %60 : vector<1x16x16xbf16> to vector<16x16xbf16>
    %cst_63 = arith.constant dense<0.000000e+00> : vector<128x16xf32>
    %62 = tpu.matmul %59, %61, %cst_63 {dimension_numbers = #tpu.dot_dimension_numbers<[1], [0], [0], [1], [0, 0, 1, 1], [], []>} : vector<128x16xbf16>, vector<16x16xbf16>, vector<128x16xf32> -> vector<128x16xf32>
    %63 = arith.addf %57, %62 : vector<128x16xf32>
    %c1_64 = arith.constant 1 : index
    %c0_65 = arith.constant 0 : index
    %c0_66 = arith.constant 0 : index
    %64 = vector.load %arg11[%c1_64, %c0_65, %c0_66] : memref<10x18x16xbf16, #tpu.memory_space<vmem>>, vector<8x16x16xbf16>
    %65 = vector.shape_cast %64 : vector<8x16x16xbf16> to vector<128x16xbf16>
    %c3 = arith.constant 3 : index
    %c0_67 = arith.constant 0 : index
    %c0_68 = arith.constant 0 : index
    %66 = vector.load %arg6[%c3, %c0_67, %c0_68] : memref<9x16x16xbf16, #tpu.memory_space<vmem>>, vector<1x16x16xbf16>
    %67 = vector.shape_cast %66 : vector<1x16x16xbf16> to vector<16x16xbf16>
    %cst_69 = arith.constant dense<0.000000e+00> : vector<128x16xf32>
    %68 = tpu.matmul %65, %67, %cst_69 {dimension_numbers = #tpu.dot_dimension_numbers<[1], [0], [0], [1], [0, 0, 1, 1], [], []>} : vector<128x16xbf16>, vector<16x16xbf16>, vector<128x16xf32> -> vector<128x16xf32>
    %69 = arith.addf %63, %68 : vector<128x16xf32>
    %c1_70 = arith.constant 1 : index
    %c1_71 = arith.constant 1 : index
    %c0_72 = arith.constant 0 : index
    %70 = vector.load %arg11[%c1_70, %c1_71, %c0_72] : memref<10x18x16xbf16, #tpu.memory_space<vmem>>, vector<8x16x16xbf16>
    %71 = vector.shape_cast %70 : vector<8x16x16xbf16> to vector<128x16xbf16>
    %c4 = arith.constant 4 : index
    %c0_73 = arith.constant 0 : index
    %c0_74 = arith.constant 0 : index
    %72 = vector.load %arg6[%c4, %c0_73, %c0_74] : memref<9x16x16xbf16, #tpu.memory_space<vmem>>, vector<1x16x16xbf16>
    %73 = vector.shape_cast %72 : vector<1x16x16xbf16> to vector<16x16xbf16>
    %cst_75 = arith.constant dense<0.000000e+00> : vector<128x16xf32>
    %74 = tpu.matmul %71, %73, %cst_75 {dimension_numbers = #tpu.dot_dimension_numbers<[1], [0], [0], [1], [0, 0, 1, 1], [], []>} : vector<128x16xbf16>, vector<16x16xbf16>, vector<128x16xf32> -> vector<128x16xf32>
    %75 = arith.addf %69, %74 : vector<128x16xf32>
    %c1_76 = arith.constant 1 : index
    %c2_77 = arith.constant 2 : index
    %c0_78 = arith.constant 0 : index
    %76 = vector.load %arg11[%c1_76, %c2_77, %c0_78] : memref<10x18x16xbf16, #tpu.memory_space<vmem>>, vector<8x16x16xbf16>
    %77 = vector.shape_cast %76 : vector<8x16x16xbf16> to vector<128x16xbf16>
    %c5 = arith.constant 5 : index
    %c0_79 = arith.constant 0 : index
    %c0_80 = arith.constant 0 : index
    %78 = vector.load %arg6[%c5, %c0_79, %c0_80] : memref<9x16x16xbf16, #tpu.memory_space<vmem>>, vector<1x16x16xbf16>
    %79 = vector.shape_cast %78 : vector<1x16x16xbf16> to vector<16x16xbf16>
    %cst_81 = arith.constant dense<0.000000e+00> : vector<128x16xf32>
    %80 = tpu.matmul %77, %79, %cst_81 {dimension_numbers = #tpu.dot_dimension_numbers<[1], [0], [0], [1], [0, 0, 1, 1], [], []>} : vector<128x16xbf16>, vector<16x16xbf16>, vector<128x16xf32> -> vector<128x16xf32>
    %81 = arith.addf %75, %80 : vector<128x16xf32>
    %c2_82 = arith.constant 2 : index
    %c0_83 = arith.constant 0 : index
    %c0_84 = arith.constant 0 : index
    %82 = vector.load %arg11[%c2_82, %c0_83, %c0_84] : memref<10x18x16xbf16, #tpu.memory_space<vmem>>, vector<8x16x16xbf16>
    %83 = vector.shape_cast %82 : vector<8x16x16xbf16> to vector<128x16xbf16>
    %c6 = arith.constant 6 : index
    %c0_85 = arith.constant 0 : index
    %c0_86 = arith.constant 0 : index
    %84 = vector.load %arg6[%c6, %c0_85, %c0_86] : memref<9x16x16xbf16, #tpu.memory_space<vmem>>, vector<1x16x16xbf16>
    %85 = vector.shape_cast %84 : vector<1x16x16xbf16> to vector<16x16xbf16>
    %cst_87 = arith.constant dense<0.000000e+00> : vector<128x16xf32>
    %86 = tpu.matmul %83, %85, %cst_87 {dimension_numbers = #tpu.dot_dimension_numbers<[1], [0], [0], [1], [0, 0, 1, 1], [], []>} : vector<128x16xbf16>, vector<16x16xbf16>, vector<128x16xf32> -> vector<128x16xf32>
    %87 = arith.addf %81, %86 : vector<128x16xf32>
    %c2_88 = arith.constant 2 : index
    %c1_89 = arith.constant 1 : index
    %c0_90 = arith.constant 0 : index
    %88 = vector.load %arg11[%c2_88, %c1_89, %c0_90] : memref<10x18x16xbf16, #tpu.memory_space<vmem>>, vector<8x16x16xbf16>
    %89 = vector.shape_cast %88 : vector<8x16x16xbf16> to vector<128x16xbf16>
    %c7 = arith.constant 7 : index
    %c0_91 = arith.constant 0 : index
    %c0_92 = arith.constant 0 : index
    %90 = vector.load %arg6[%c7, %c0_91, %c0_92] : memref<9x16x16xbf16, #tpu.memory_space<vmem>>, vector<1x16x16xbf16>
    %91 = vector.shape_cast %90 : vector<1x16x16xbf16> to vector<16x16xbf16>
    %cst_93 = arith.constant dense<0.000000e+00> : vector<128x16xf32>
    %92 = tpu.matmul %89, %91, %cst_93 {dimension_numbers = #tpu.dot_dimension_numbers<[1], [0], [0], [1], [0, 0, 1, 1], [], []>} : vector<128x16xbf16>, vector<16x16xbf16>, vector<128x16xf32> -> vector<128x16xf32>
    %93 = arith.addf %87, %92 : vector<128x16xf32>
    %c2_94 = arith.constant 2 : index
    %c2_95 = arith.constant 2 : index
    %c0_96 = arith.constant 0 : index
    %94 = vector.load %arg11[%c2_94, %c2_95, %c0_96] : memref<10x18x16xbf16, #tpu.memory_space<vmem>>, vector<8x16x16xbf16>
    %95 = vector.shape_cast %94 : vector<8x16x16xbf16> to vector<128x16xbf16>
    %c8 = arith.constant 8 : index
    %c0_97 = arith.constant 0 : index
    %c0_98 = arith.constant 0 : index
    %96 = vector.load %arg6[%c8, %c0_97, %c0_98] : memref<9x16x16xbf16, #tpu.memory_space<vmem>>, vector<1x16x16xbf16>
    %97 = vector.shape_cast %96 : vector<1x16x16xbf16> to vector<16x16xbf16>
    %cst_99 = arith.constant dense<0.000000e+00> : vector<128x16xf32>
    %98 = tpu.matmul %95, %97, %cst_99 {dimension_numbers = #tpu.dot_dimension_numbers<[1], [0], [0], [1], [0, 0, 1, 1], [], []>} : vector<128x16xbf16>, vector<16x16xbf16>, vector<128x16xf32> -> vector<128x16xf32>
    %99 = arith.addf %93, %98 : vector<128x16xf32>
    %c0_100 = arith.constant 0 : index
    %c0_101 = arith.constant 0 : index
    %100 = vector.load %arg7[%c0_100, %c0_101] : memref<1x16xf32, #tpu.memory_space<vmem>>, vector<1x16xf32>
    %101 = vector.broadcast %100 : vector<1x16xf32> to vector<128x16xf32>
    %102 = arith.addf %99, %101 : vector<128x16xf32>
    %cst_102 = arith.constant 0.000000e+00 : f32
    %103 = vector.broadcast %cst_102 : f32 to vector<128x16xf32>
    %104 = arith.maximumf %102, %103 : vector<128x16xf32>
    %105 = arith.truncf %104 : vector<128x16xf32> to vector<128x16xbf16>
    %c0_103 = arith.constant 0 : index
    %c0_104 = arith.constant 0 : index
    %106 = vector.load %arg8[%c0_103, %c0_104] : memref<16x64xbf16, #tpu.memory_space<vmem>>, vector<16x64xbf16>
    %cst_105 = arith.constant dense<0.000000e+00> : vector<128x64xf32>
    %107 = tpu.matmul %105, %106, %cst_105 {dimension_numbers = #tpu.dot_dimension_numbers<[1], [0], [0], [1], [0, 0, 1, 1], [], []>} : vector<128x16xbf16>, vector<16x64xbf16>, vector<128x64xf32> -> vector<128x64xf32>
    %c0_106 = arith.constant 0 : index
    %c0_107 = arith.constant 0 : index
    %108 = vector.load %arg9[%c0_106, %c0_107] : memref<1x64xf32, #tpu.memory_space<vmem>>, vector<1x64xf32>
    %109 = vector.broadcast %108 : vector<1x64xf32> to vector<128x64xf32>
    %110 = arith.addf %107, %109 : vector<128x64xf32>
    %111 = arith.extf %1 : vector<128x64xbf16> to vector<128x64xf32>
    %112 = arith.addf %110, %111 : vector<128x64xf32>
    %cst_108 = arith.constant 0.000000e+00 : f32
    %113 = vector.broadcast %cst_108 : f32 to vector<128x64xf32>
    %114 = arith.maximumf %112, %113 : vector<128x64xf32>
    %115 = arith.truncf %114 : vector<128x64xf32> to vector<128x64xbf16>
    %c0_109 = arith.constant 0 : index
    %c0_110 = arith.constant 0 : index
    %c0_111 = arith.constant 0 : index
    %116 = vector.load %arg10[%c0_109, %c0_110, %c0_111] : memref<1x128x64xbf16, #tpu.memory_space<vmem>>, vector<1x128x64xbf16>
    %117 = vector.shape_cast %116 : vector<1x128x64xbf16> to vector<128x64xbf16>
    %118 = vector.shape_cast %115 : vector<128x64xbf16> to vector<1x128x64xbf16>
    tpu.vector_store %arg10[%c0_109, %c0_110, %c0_111], %118 {strides = array<i32>} : memref<1x128x64xbf16, #tpu.memory_space<vmem>>, vector<1x128x64xbf16>,
    return
  }
  func.func @transform_0(%arg0: i32, %arg1: i32) -> (i32, i32, i32) {
    %c0_i32 = arith.constant 0 : i32
    %c0_i32_0 = arith.constant 0 : i32
    return %arg0, %arg1, %c0_i32 : i32, i32, i32
  }
  func.func @transform_1(%arg0: i32, %arg1: i32) -> (i32, i32, i32, i32) {
    %c0_i32 = arith.constant 0 : i32
    %c0_i32_0 = arith.constant 0 : i32
    %c0_i32_1 = arith.constant 0 : i32
    return %arg0, %arg1, %c0_i32, %c0_i32_0 : i32, i32, i32, i32
  }
  func.func @transform_2(%arg0: i32, %arg1: i32) -> (i32, i32) {
    %c0_i32 = arith.constant 0 : i32
    %c0_i32_0 = arith.constant 0 : i32
    %c0_i32_1 = arith.constant 0 : i32
    return %c0_i32, %c0_i32_0 : i32, i32
  }
  func.func @transform_3(%arg0: i32, %arg1: i32) -> (i32, i32) {
    %c0_i32 = arith.constant 0 : i32
    %c0_i32_0 = arith.constant 0 : i32
    %c0_i32_1 = arith.constant 0 : i32
    return %c0_i32, %c0_i32_0 : i32, i32
  }
  func.func @transform_4(%arg0: i32, %arg1: i32) -> (i32, i32, i32) {
    %c0_i32 = arith.constant 0 : i32
    %c0_i32_0 = arith.constant 0 : i32
    %c0_i32_1 = arith.constant 0 : i32
    %c0_i32_2 = arith.constant 0 : i32
    return %c0_i32, %c0_i32_0, %c0_i32_1 : i32, i32, i32
  }
  func.func @transform_5(%arg0: i32, %arg1: i32) -> (i32, i32) {
    %c0_i32 = arith.constant 0 : i32
    %c0_i32_0 = arith.constant 0 : i32
    %c0_i32_1 = arith.constant 0 : i32
    return %c0_i32, %c0_i32_0 : i32, i32
  }
  func.func @transform_6(%arg0: i32, %arg1: i32) -> (i32, i32) {
    %c0_i32 = arith.constant 0 : i32
    %c0_i32_0 = arith.constant 0 : i32
    %c0_i32_1 = arith.constant 0 : i32
    return %c0_i32, %c0_i32_0 : i32, i32
  }
  func.func @transform_7(%arg0: i32, %arg1: i32) -> (i32, i32) {
    %c0_i32 = arith.constant 0 : i32
    %c0_i32_0 = arith.constant 0 : i32
    %c0_i32_1 = arith.constant 0 : i32
    return %c0_i32, %c0_i32_0 : i32, i32
  }
  func.func @transform_8(%arg0: i32, %arg1: i32) -> (i32, i32, i32) {
    %c0_i32 = arith.constant 0 : i32
    %c0_i32_0 = arith.constant 0 : i32
    return %arg0, %arg1, %c0_i32 : i32, i32, i32
  }
}

</mosaic_0001>

<bundles_post_ra>
// kernel: tpu_custom_call.1
= control target key start
LH: loop header
LB: loop body
LE: loop exit
PB: predicated region body
PF: predicated region fallthrough
CT: control target
= control target key end

     0   :  { %s5030_s27 = smov 0   ;;  %s5032_s28 = smov 0   ;;  %s6082_s0 = inlined_call_operand.vmem [shape: bf16[2,256,64], index: 0, kind: input, shape index: {}]   ;;  %s6083_s1 = inlined_call_operand.vmem [shape: bf16[2,4,16,64], index: 1, kind: input, shape index: {}]   ;;  %s6084_s2 = inlined_call_operand.vmem [shape: bf16[64,16], index: 2, kind: input, shape index: {}]   ;;  %s6085_s3 = inlined_call_operand.vmem [shape: f32[1,16], index: 3, kind: input, shape index: {}]   ;;  %s6086_s4 = inlined_call_operand.vmem [shape: bf16[9,16,16], index: 4, kind: input, shape index: {}]   ;;  %s6087_s5 = inlined_call_operand.vmem [shape: f32[1,16], index: 5, kind: input, shape index: {}]   ;;  %s6088_s6 = inlined_call_operand.vmem [shape: bf16[16,64], index: 6, kind: input, shape index: {}]   ;;  %s6089_s7 = inlined_call_operand.vmem [shape: f32[1,64], index: 7, kind: input, shape index: {}]   ;;  %s6090_s8 = inlined_call_operand.vmem [shape: bf16[2,256,64], index: 8, kind: output, shape index: {}]  }
   0x1   :  { %s5034_s29 = smov 0   ;;  %s5036_s30 = smov 0  }
   0x2   :  { %s5038_s9 = smov 0  }
   0x3 LB: > { %s27_s10 = sadd.s32 1, %s4973_s29  ;;  %s30_s11 = sadd.s32 1, %s4977_s30  ;;  %s4981_s9 = sphi %s5038_s9, %s18_s9   ;;  %s4977_s30 = sphi %s5036_s30, %s6124_s30   ;;  %s4973_s29 = sphi %s5034_s29, %s6123_s29   ;;  %s4969_s28 = sphi %s5032_s28, %s6122_s28   ;;  %s4965_s27 = sphi %s5030_s27, %s6121_s27  }
   0x4   : > { %p28_p0 = scmp.ge.s32.totalorder %s27_s10, 2  ;;  %p4053_p1 = scmp.ge.s32.totalorder %s4981_s9, 1 }
   0x5   : > { %p301_p2 = scmp.lt.s32.totalorder %s4981_s9, 5 }
   0x6   : > { %s6126_s10 = smov (%p28_p0, %s27_s10), 0  ;;  %s6128_s11 = smov (!%p28_p0, %s30_s11), %s4977_s30 }
   0x7   : > { %p302_p3 = pnand %p4053_p1, %p301_p2  ;;  %p32_p4 = scmp.ge.s32.totalorder %s6128_s11, 2 }
   0x9   : > { %s6130_s11 = smov (%p32_p4, %s6128_s11), 0  ;;  %305 = sbr.rel (%p302_p3) target bundleno = 951 (0x3b7), region = 52 }
  0x10   : > { %v4879_v0 = vld [vmem:[%s6084_s2] sm:$0xff]   ;;  %v4983_v1 = vmov 0.0   ;;  %v4880_v2 = vld [vmem:[%s6084_s2 + $0x8] sm:$0xff]   ;;  %s4054_s16 = sshll.u32 %s4965_s27, 4  ;;  %p354_p5 = scmp.lt.s32.totalorder %s4969_s28, 1  ;;  %v4881_v3 = vld [vmem:[%s6084_s2 + $0x10] sm:$0xff]  }
  0x11   : > { %4505 = vmatprep.subr.bf16.mxu1 %v4983_v1  ;;  %4481 = vmatprep.subr.bf16.mxu0 %v4879_v0  ;;  %vm4984_vm0 = vmmov 0   ;;  %p356_p6 = scmp.lt.s32.totalorder %s4054_s16, 31  ;;  %s4057_s19 = sshll.u32 %s4965_s27, 1  ;;  %v4882_v4 = vld [vmem:[%s6084_s2 + $0x18] sm:$0xff]   ;;  %vm480_vm1 = vcmask 523264   ;;  %v4893_v15 = vld [vmem:[%s6086_s4 + $0x20] sm:$0xff]  }
  0x12   : > { %4506 = vmatpush3.bf16.msra.mxu1 %v4879_v0  ;;  %4482 = vmatpush3.bf16.msra.mxu0 %v4879_v0  ;;  %s6132_s28 = smov (!%p354_p5, %s4969_s28), 1  ;;  %p366_p7 = scmp.lt.s32.totalorder %s4057_s19, 3  ;;  %v4894_v16 = vld [vmem:[%s6086_s4 + $0x8] sm:$0xff]   ;;  %v5129_v18 = vld [vmem:[%s6085_s3] ss:$0 sm:$0xff]  ;;  %vm764_vm3 = vcmask 125952  }
  0x13   : > { %4507 = vmatprep.subr.bf16.mxu1 %v4983_v1  ;;  %4483 = vmatprep.subr.bf16.mxu0 %v4880_v2  ;;  %s6134_s16 = smov (!%p356_p6, %s4054_s16), 31  ;;  %s4055_s20 = sshll.u32 %s6132_s28, 5  ;;  %v5122_v17 = vld [vmem:[%s6086_s4 + $0x28] sm:$0xff]   ;;  %v5136_v19 = vld [vmem:[%s6086_s4] sm:$0xff]   ;;  %vm741_vm2 = vsmask.f32 256 }
  0x14   : > { %4513 = vmatprep.mubr.msk.bf16.mxu1 %vm4984_vm0, %v4983_v1  ;;  %s5081_s23 = sadd.s32 %s4055_s20, %s6134_s16  ;;  %s4059_s25 = sshll.u32 %s6132_s28, 3  ;;  %vm765_vm4 = vsmask.f32 7938  ;;  %vm772_vm5 = vcmask 122880   ;;  %vm742_vm6 = vsmask.f32 4368 }
  0x15   : > { %s4056_s24 = sshll.u32 %s5081_s23, 2  ;;  %s6136_s19 = smov (!%p366_p7, %s4057_s19), 3  ;;  %v993_v53 = vld [vmem:[#allocation2 + $0x18] sm:$0xf]  ;;  %vm5148_vm7 = vmand %vm764_vm3, %vm765_vm4  ;;  %vm1163_vm11 = vsmask.f32 3328 }
  0x16   : > { %4508 = vmatpush3.bf16.msra.mxu1 %v4880_v2  ;;  %4484 = vmatpush3.bf16.msra.mxu0 %v4880_v2  ;;  %s5089_s13 = scalar_lea.vmem %s6082_s0, %s4056_s24  ;;  %s4058_s28 = sshll.u32 %s6136_s19, 1  ;;  %vm5154_vm8 = vmand %vm772_vm5, %vm741_vm2  ;;  %vm1164_vm12 = vsmask.f32 7440  ;;  %vm1391_vm13 = vcmask 130048   ;;  %vm1704_vm15 = vcmask 1042432  }
  0x17   : > { %4509 = vmatprep.subr.bf16.mxu1 %v4983_v1  ;;  %4485 = vmatprep.subr.bf16.mxu0 %v4881_v3  ;;  %v385_v5 = vld [vmem:[%s5089_s13] sm:$0xff]   ;;  %v387_v6 = vld [vmem:[%s5089_s13 + $0x8] sm:$0xff]   ;;  %v389_v7 = vld [vmem:[%s5089_s13 + $0x10] sm:$0xff]   ;;  %s370_s14 = sadd.s32 %s4059_s25, %s4058_s28  ;;  %p618_p8 = scmp.gt.s32.totalorder %s4965_s27, 0 }
  0x18   : > { %4489 = vmatprep.mubr.msk.bf16.mxu0 %vm480_vm1, %v385_v5  ;;  %s4060_s15 = sshll.u32 %s370_s14, 2  ;;  %v391_v9 = vld [vmem:[%s5089_s13 + $0x18] sm:$0xff]   ;;  %v393_v10 = vld [vmem:[%s5089_s13 + $0x20] sm:$0xff]   ;;  %v395_v11 = vld [vmem:[%s5089_s13 + $0x28] sm:$0xff]   ;;  %p620_p9 = scmp.lt.s32.totalorder %s4965_s27, 1 }
  0x19   : > { %s372_s18 = scalar_lea.vmem %s6083_s1, %s4060_s15  ;;  %v397_v12 = vld [vmem:[%s5089_s13 + $0x30] sm:$0xff]   ;;  %v399_v14 = vld [vmem:[%s5089_s13 + $0x38] sm:$0xff]   ;;  %vm5160_vm9 = vmor %vm741_vm2, %vm742_vm6  ;;  %s6015_s25 = scalar_lea.vmem %s6090_s8, %s4056_s24  ;;  %vm3921_vm2 = vcmask 519168  }
  0x1a   : > { %4510 = vmatpush3.bf16.msra.mxu1 %v4881_v3  ;;  %4486 = vmatpush3.bf16.msra.mxu0 %v4881_v3  ;;  %v4884_v8 = vld [vmem:[%s372_s18] sm:$0xff]   ;;  %v4892_v13 = vld [vmem:[%s372_s18 + $0x8] sm:$0xff]   ;;  %s5131_s14 = scalar_select %p618_p8, 1.0, 0.0  ;;  %vm5202_vm10 = vmand %vm772_vm5, %vm765_vm4 }
  0x1b   : > { %4511 = vmatprep.subr.bf16.mxu1 %v4983_v1  ;;  %4487 = vmatprep.subr.bf16.mxu0 %v4882_v4  ;;  %vm5321_vm14 = vmor %vm1163_vm11, %vm1164_vm12  ;;  %s5562_s21 = scalar_select %p620_p9, 1.0, 0.0 }
  0x1c   : > { %v675_v25 = vstv %s5131_s14 }
  0x1e   : > { %4512 = vmatpush3.bf16.msra.mxu1 %v4882_v4  ;;  %4488 = vmatpush3.bf16.msra.mxu0 %v4882_v4 }
  0x1f   : > { %4517 = vmatprep.subr.bf16.mxu1 %v4983_v1  ;;  %4529 = vmatprep.subr.bf16.mxu0 %v4894_v16 }
  0x21   : > { %4490 = vmatmul.mubr.msk.bf16.vlgmr.msra.gmra.mrb[0].mxu0 %vm480_vm1, %v387_v6  ;;  %4514 = vmatmul.mubr.msk.bf16.vlgmr.msra.gmra.mrb[0].mxu1 %vm480_vm1, %v4884_v8 }
  0x22   : > { %4493 = vmatprep.mubr.msk.bf16.mxu0 %vm480_vm1, %v389_v7  ;;  %4518 = vmatpush3.bf16.msra.mxu1 %v4879_v0 }
  0x23   : > { %4525 = vmatprep.mubr.msk.bf16.mxu1 %vm4984_vm0, %v4983_v1  ;;  %4519 = vmatprep.subr.bf16.mxu1 %v4983_v1  ;;  %vm1705_vm0 = vcmask 1046532  }
  0x24   : > { %4530 = vmatpush3.bf16.msra.mxu0 %v4894_v16 }
  0x25   : > { %4547 = vmatprep.subr.bf16.mxu0 %v5136_v19 }
  0x26   : > { %4520 = vmatpush3.bf16.msra.mxu1 %v4880_v2 }
  0x27   : > { %4521 = vmatprep.subr.bf16.mxu1 %v4983_v1 }
  0x29   : > { %4494 = vmatmul.mubr.msk.bf16.gmra.mrb[4].mxu0 %vm480_vm1, %v391_v9 }
  0x2a   : > { %4497 = vmatprep.mubr.msk.bf16.mxu0 %vm480_vm1, %v393_v10  ;;  %4522 = vmatpush3.bf16.msra.mxu1 %v4881_v3  ;;  %v986_v3 = vld [vmem:[#allocation2 + $0xc] sm:$0xf] }
  0x2b   : > { %4523 = vmatprep.subr.bf16.mxu1 %v4983_v1 }
  0x2e   : > { %4524 = vmatpush3.bf16.msra.mxu1 %v4882_v4 }
  0x2f   : > { %4601 = vmatprep.subr.bf16.mxu1 %v4893_v15 }
  0x31   : > { %4498 = vmatmul.mubr.msk.bf16.gmra.mrb[8].mxu0 %vm480_vm1, %v395_v11  ;;  %4526 = vmatmul.mubr.msk.bf16.vlgmr.msra.gmra.mrb[4].mxu1 %vm480_vm1, %v4892_v13  ;;  %v997_v11 = vld [vmem:[#allocation2 + $0x20] sm:$0x1] }
  0x32   : > { %4501 = vmatprep.mubr.msk.bf16.mxu0 %vm480_vm1, %v397_v12  ;;  %4602 = vmatpush3.bf16.msra.mxu1 %v4893_v15  ;;  %v767_v13 = vld [vmem:[#allocation2] sm:$0xf] }
  0x33   : > { %4619 = vmatprep.subr.bf16.mxu1 %v5122_v17 }
  0x39   : > { %4502 = vmatmul.mubr.msk.bf16.gmra.mrb[12].mxu0 %vm480_vm1, %v399_v14  ;;  %vm5556_vm1 = vmor %vm1704_vm15, %vm1705_vm0 }
  0xf4   : > { %v4491_v20 = vpop.f32.mrb[0].mxu0  ;;  %v666_v21 = vpop.f32.mrb[0].mxu1 }
  0xf5   : > { %v548_v22 = vadd.f32 %v4491_v20, %v5129_v18  ;;  %v539_v23 = vpop.f32.mrb[1].mxu0  ;;  %v667_v24 = vadd.f32 %v5129_v18, %v666_v21  ;;  %v4515_v28 = vpop.f32.mrb[1].mxu1 }
  0xf6   : > { %v540_v26 = vadd.f32 %v5129_v18, %v539_v23  ;;  %v4492_v27 = vpop.f32.mrb[2].mxu0  ;;  %v669_v32 = vpop.f32.mrb[2].mxu1 }
  0xf7   : > { %v604_v29 = vmax.f32 %v548_v22, 0.0  ;;  %v551_v30 = vadd.f32 %v4492_v27, %v5129_v18  ;;  %v542_v31 = vpop.f32.mrb[3].mxu0  ;;  %v673_v33 = vmax.f32 %v667_v24, 0.0  ;;  %v670_v36 = vadd.f32 %v5129_v18, %v669_v32  ;;  %v4516_v37 = vpop.f32.mrb[3].mxu1 }
  0xf8   : > { %v602_v34 = vmax.f32 %v540_v26, 0.0  ;;  %v543_v35 = vadd.f32 %v5129_v18, %v542_v31 }
  0xf9   : > { %v4337_v38 = vpack.c.bf16 %v604_v29, %v604_v29  ;;  %v605_v39 = vmax.f32 %v551_v30, 0.0  ;;  %v676_v40 = vmul.f32 %v675_v25, %v673_v33  ;;  %v674_v43 = vmax.f32 %v670_v36, 0.0 }
  0xfa   : > { %v4335_v41 = vpack.c.bf16 %v602_v34, %v602_v34  ;;  %v603_v42 = vmax.f32 %v543_v35, 0.0 }
  0xfb   : > { %v843_v44 = vshrl.u32 %v4337_v38, 16  ;;  %v846_v45 = vshll.u32 %v4337_v38, 16  ;;  %v4338_v46 = vpack.c.bf16 %v605_v39, %v605_v39  ;;  %v4333_v47 = vpack.c.bf16 %v676_v40, %v676_v40 }
  0xfc   : > { %v826_v48 = vshrl.u32 %v4335_v41, 16  ;;  %v829_v49 = vshll.u32 %v4335_v41, 16  ;;  %v4336_v50 = vpack.c.bf16 %v603_v42, %v603_v42  ;;  %v4495_v51 = vpop.f32.mrb[4].mxu0  ;;  %v677_v56 = vmul.f32 %v675_v25, %v674_v43  ;;  %v990_v25 = vld [vmem:[#allocation2 + $0x14] sm:$0x1] }
  0xfd   : > { %v845_v52 = vrot.slane %v843_v44, 7  ;;  %v851_v54 = vshrl.u32 %v4338_v46, 16  ;;  %v854_v55 = vshll.u32 %v4338_v46, 16  ;;  %v555_v57 = vpop.f32.mrb[5].mxu0  ;;  %v745_v58 = vshrl.u32 %v4333_v47, 16 }
  0xfe   : > { %v748_v59 = vshll.u32 %v4333_v47, 16  ;;  %v828_v61 = vrot.slane %v826_v48, 7  ;;  %v834_v62 = vshrl.u32 %v4336_v50, 16  ;;  %v4496_v63 = vpop.f32.mrb[6].mxu0  ;;  %v837_v5 = vshll.u32 %v4336_v50, 16 }
  0xff   : > { %v848_v1 = vor.u32 %v846_v45, %v845_v52  ;;  %v849_v2 = vrot.slane %v845_v52, 4  ;;  %v853_v4 = vrot.slane %v851_v54, 7  ;;  %v558_v6 = vpop.f32.mrb[7].mxu0  ;;  %v747_v7 = vrot.slane %v745_v58, 7  ;;  %v774_v41 = vld [vmem:[#allocation2 + $0x8] sm:$0x1] }
 0x100   : > { %v831_v8 = vor.u32 %v829_v49, %v828_v61  ;;  %v832_v9 = vrot.slane %v828_v61, 4  ;;  %v836_v12 = vrot.slane %v834_v62, 7  ;;  %v4334_v20 = vpack.c.bf16 %v677_v56, %v677_v56 }
 0x101   : > { %v994_v14 = vsel %vm5148_vm7, %v848_v1, %v993_v53  ;;  %v856_v15 = vor.u32 %v854_v55, %v853_v4  ;;  %v858_v16 = vrot.slane %v853_v4, 4  ;;  %v750_v21 = vor.u32 %v748_v59, %v747_v7 }
 0x102   : > { %v751_v22 = vrot.slane %v747_v7, 4  ;;  %995 = vst [vmem:[#allocation2 + $0x18] sm:$0xf] %v994_v14  ;;  %v987_v23 = vsel %vm5148_vm7, %v831_v8, %v986_v3  ;;  %v839_v24 = vor.u32 %v837_v5, %v836_v12  ;;  %v841_v28 = vrot.slane %v836_v12, 4 }
 0x103   : > { %988 = vst [vmem:[#allocation2 + $0xc] sm:$0xf] %v987_v23  ;;  %v857_v26 = vsel %vm5160_vm9, %v849_v2, %v856_v15  ;;  %v998_v27 = vsel %vm5154_vm8, %v858_v16, %v997_v11  ;;  %v753_v29 = vshrl.u32 %v4334_v20, 16  ;;  %v768_v30 = vsel %vm5148_vm7, %v750_v21, %v767_v13  ;;  %v1007_v11 = vld [vmem:[#allocation2 + $0x30] sm:$0xf] }
 0x104   : > { %996 = vst.msk [vmem:[#allocation2 + $0x1c] sm:$0xf] %vm764_vm3, %v857_v26  ;;  %999 = vst [vmem:[#allocation2 + $0x20] sm:$0x1] %v998_v27  ;;  %v840_v31 = vsel %vm5160_vm9, %v832_v9, %v839_v24  ;;  %v756_v32 = vshll.u32 %v4334_v20, 16  ;;  %v564_v33 = vadd.f32 %v4495_v51, %v5129_v18  ;;  %v4499_v34 = vpop.f32.mrb[8].mxu0  ;;  %v991_v35 = vsel %vm5154_vm8, %v841_v28, %v990_v25 }
 0x105   : > { %769 = vst [vmem:[#allocation2] sm:$0xf] %v768_v30  ;;  %989 = vst.msk [vmem:[#allocation2 + $0x10] sm:$0xf] %vm764_vm3, %v840_v31  ;;  %v755_v36 = vrot.slane %v753_v29, 7  ;;  %v556_v37 = vadd.f32 %v5129_v18, %v555_v57  ;;  %v567_v38 = vadd.f32 %v4496_v63, %v5129_v18  ;;  %v571_v39 = vpop.f32.mrb[9].mxu0  ;;  %v559_v43 = vadd.f32 %v5129_v18, %v558_v6 }
 0x106   : > { %v5183_v40 = vpop.f32.mrb[4].mxu1  ;;  %992 = vst [vmem:[#allocation2 + $0x14] sm:$0x1] %v991_v35  ;;  %v608_v42 = vmax.f32 %v564_v33, 0.0  ;;  %v5187_v44 = vadd.f32 %v4499_v34, %v5129_v18  ;;  %v5190_v45 = vadd.f32 %v5129_v18, %v571_v39  ;;  %v5192_v46 = vpop.f32.mrb[10].mxu0  ;;  %v6103_v58 = vmov 0 }
 0x107   : > { %v4527_v47 = vpop.f32.mrb[5].mxu1  ;;  %v758_v48 = vor.u32 %v756_v32, %v755_v36  ;;  %v760_v49 = vrot.slane %v755_v36, 4  ;;  %v606_v50 = vmax.f32 %v556_v37, 0.0  ;;  %v609_v51 = vmax.f32 %v567_v38, 0.0  ;;  %v5194_v52 = vpop.f32.mrb[11].mxu0 }
 0x108   : > { %v4341_v53 = vpack.c.bf16 %v608_v42, %v608_v42  ;;  %v607_v54 = vmax.f32 %v559_v43, 0.0  ;;  %v612_v55 = vmax.f32 %v5187_v44, 0.0  ;;  %v610_v56 = vmax.f32 %v5190_v45, 0.0  ;;  %v5198_v57 = vpop.f32.mrb[6].mxu1  ;;  %v1000_v21 = vld [vmem:[#allocation2 + $0x24] sm:$0xf] }
 0x109   : > { %v6104_v58 = vsel %vm5202_vm10, 4294967295, %v6103_v58  ;;  %v1082_v59 = vld [vmem:[#allocation2 + $0x18] sm:$0x1]  ;;  %v759_v61 = vsel %vm5160_vm9, %v751_v22, %v758_v48  ;;  %v775_v62 = vsel %vm5154_vm8, %v760_v49, %v774_v41  ;;  %v4339_v63 = vpack.c.bf16 %v606_v50, %v606_v50  ;;  %v4528_v2 = vpop.f32.mrb[7].mxu1  ;;  %v1004_v39 = vld [vmem:[#allocation2 + $0x2c] sm:$0x1] }
 0x10a   : > { %6105 = vst [vmem:[#allocation3_spill] sm:$0xff] %v6104_v58  ;;  %v4342_v1 = vpack.c.bf16 %v609_v51, %v609_v51  ;;  %v1083_v3 = vsel %vm5154_vm8, 0, %v1082_v59  ;;  %v1079_v4 = vld [vmem:[#allocation2 + $0xc] sm:$0x1]  ;;  %771 = vst.msk [vmem:[#allocation2 + $0x4] sm:$0xf] %vm764_vm3, %v759_v61  ;;  %v4340_v7 = vpack.c.bf16 %v607_v54, %v607_v54  ;;  %v4345_v45 = vpack.c.bf16 %v612_v55, %v612_v55 }
 0x10b   : > { %776 = vst [vmem:[#allocation2 + $0x8] sm:$0x1] %v775_v62  ;;  %v877_v5 = vshrl.u32 %v4341_v53, 16  ;;  %v880_v6 = vshll.u32 %v4341_v53, 16  ;;  %1084 = vst [vmem:[#allocation2 + $0x18] sm:$0x1] %v1083_v3  ;;  %v4343_v53 = vpack.c.bf16 %v610_v56, %v610_v56  ;;  %v583_v2 = vadd.f32 %v5192_v46, %v5129_v18 }
 0x10c   : > { %v1080_v8 = vsel %vm5154_vm8, 0, %v1079_v4  ;;  %v1113_v9 = vld [vmem:[#allocation2 + $0x20] sm:$0x1]  ;;  %v860_v12 = vshrl.u32 %v4339_v63, 16  ;;  %v863_v13 = vshll.u32 %v4339_v63, 16  ;;  %v885_v14 = vshrl.u32 %v4342_v1, 16 }
 0x10d   : > { %v1076_v15 = vld [vmem:[#allocation2] sm:$0x1]  ;;  %1081 = vst [vmem:[#allocation2 + $0xc] sm:$0x1] %v1080_v8  ;;  %v1114_v16 = vsel %vm5202_vm10, 0, %v1113_v9  ;;  %v879_v20 = vrot.slane %v877_v5, 7  ;;  %v575_v4 = vadd.f32 %v5129_v18, %v5194_v52 }
 0x10e   : > { %v888_v22 = vshll.u32 %v4342_v1, 16  ;;  %v868_v23 = vshrl.u32 %v4340_v7, 16  ;;  %v1077_v24 = vsel %vm5154_vm8, 0, %v1076_v15  ;;  %1115 = vst [vmem:[#allocation2 + $0x20] sm:$0x1] %v1114_v16  ;;  %v862_v26 = vrot.slane %v860_v12, 7 }
 0x10f   : > { %v1110_v25 = vld [vmem:[#allocation2 + $0x14] sm:$0x1]  ;;  %v887_v27 = vrot.slane %v885_v14, 7  ;;  %v871_v28 = vshll.u32 %v4340_v7, 16  ;;  %1078 = vst [vmem:[#allocation2] sm:$0x1] %v1077_v24  ;;  %v882_v30 = vor.u32 %v880_v6, %v879_v20 }
 0x110   : > { %v1111_v29 = vsel %vm5202_vm10, 0, %v1110_v25  ;;  %v883_v31 = vrot.slane %v879_v20, 4  ;;  %v1011_v32 = vld [vmem:[#allocation2 + $0x38] sm:$0x1]  ;;  %v870_v33 = vrot.slane %v868_v23, 7  ;;  %v4503_v34 = vpop.f32.mrb[12].mxu0  ;;  %v865_v35 = vor.u32 %v863_v13, %v862_v26 }
 0x111   : > { %1112 = vst [vmem:[#allocation2 + $0x14] sm:$0x1] %v1111_v29  ;;  %v866_v36 = vrot.slane %v862_v26, 4  ;;  %v890_v37 = vor.u32 %v888_v22, %v887_v27  ;;  %v892_v38 = vrot.slane %v887_v27, 4  ;;  %v587_v41 = vpop.f32.mrb[13].mxu0  ;;  %v1008_v42 = vsel %vm5148_vm7, %v882_v30, %v1007_v11 }
 0x112   : > { %v873_v43 = vor.u32 %v871_v28, %v870_v33  ;;  %v875_v44 = vrot.slane %v870_v33, 4  ;;  %v4504_v47 = vpop.f32.mrb[14].mxu0  ;;  %v1107_v48 = vld [vmem:[#allocation2 + $0x8] sm:$0x1]  ;;  %1009 = vst [vmem:[#allocation2 + $0x30] sm:$0xf] %v1008_v42  ;;  %v1001_v49 = vsel %vm5148_vm7, %v865_v35, %v1000_v21  ;;  %v596_v5 = vadd.f32 %v4503_v34, %v5129_v18 }
 0x113   : > { %v891_v50 = vsel %vm5160_vm9, %v883_v31, %v890_v37  ;;  %v1012_v51 = vsel %vm5154_vm8, %v892_v38, %v1011_v32  ;;  %v590_v54 = vpop.f32.mrb[15].mxu0  ;;  %v1108_v59 = vsel %vm5202_vm10, 0, %v1107_v48  ;;  %1002 = vst [vmem:[#allocation2 + $0x24] sm:$0xf] %v1001_v49  ;;  %v911_v62 = vshrl.u32 %v4345_v45, 16 }
 0x114   : > { %1010 = vst.msk [vmem:[#allocation2 + $0x34] sm:$0xf] %vm764_vm3, %v891_v50  ;;  %1013 = vst [vmem:[#allocation2 + $0x38] sm:$0x1] %v1012_v51  ;;  %v874_v55 = vsel %vm5160_vm9, %v866_v36, %v873_v43  ;;  %v1005_v61 = vsel %vm5154_vm8, %v875_v44, %v1004_v39  ;;  %v914_v56 = vshll.u32 %v4345_v45, 16  ;;  %v894_v63 = vshrl.u32 %v4343_v53, 16 }
 0x115   : > { %1109 = vst [vmem:[#allocation2 + $0x8] sm:$0x1] %v1108_v59  ;;  %1003 = vst.msk [vmem:[#allocation2 + $0x28] sm:$0xf] %vm764_vm3, %v874_v55  ;;  %v897_v1 = vshll.u32 %v4343_v53, 16  ;;  %v913_v3 = vrot.slane %v911_v62, 7  ;;  %v588_v6 = vadd.f32 %v5129_v18, %v587_v41  ;;  %v599_v11 = vadd.f32 %v4504_v47, %v5129_v18 }
 0x116   : > { %1006 = vst [vmem:[#allocation2 + $0x2c] sm:$0x1] %v1005_v61  ;;  %v1021_v7 = vld [vmem:[#allocation2 + $0x48] sm:$0xf]  ;;  %v5243_v8 = vrot.slane %v894_v63, 7  ;;  %v613_v9 = vmax.f32 %v583_v2, 0.0  ;;  %v5247_v12 = vadd.f32 %v5129_v18, %v590_v54 }
 0x117   : > { %v916_v13 = vor.u32 %v914_v56, %v913_v3  ;;  %v917_v14 = vrot.slane %v913_v3, 4  ;;  %v1014_v46 = vld [vmem:[#allocation2 + $0x3c] sm:$0xf]  ;;  %v611_v15 = vmax.f32 %v575_v4, 0.0  ;;  %v616_v16 = vmax.f32 %v596_v5, 0.0 }
 0x118   : > { %v899_v52 = vor.u32 %v897_v1, %v5243_v8  ;;  %v900_v20 = vrot.slane %v5243_v8, 4  ;;  %v4346_v21 = vpack.c.bf16 %v613_v9, %v613_v9  ;;  %v614_v22 = vmax.f32 %v588_v6, 0.0  ;;  %v1025_v43 = vld [vmem:[#allocation2 + $0x50] sm:$0x1]  ;;  %v1018_v51 = vld [vmem:[#allocation2 + $0x44] sm:$0x1] }
 0x119   : > { %v1088_v23 = vld [vmem:[#allocation2 + $0x30] sm:$0x1]  ;;  %v1022_v24 = vsel %vm5148_vm7, %v916_v13, %v1021_v7  ;;  %v4344_v25 = vpack.c.bf16 %v611_v15, %v611_v15  ;;  %v4349_v26 = vpack.c.bf16 %v616_v16, %v616_v16  ;;  %v617_v27 = vmax.f32 %v599_v11, 0.0  ;;  %v1035_v54 = vld [vmem:[#allocation2 + $0x60] sm:$0xf] }
 0x11a   : > { %v1089_v18 = vsel %vm5154_vm8, 0, %v1088_v23  ;;  %v1085_v28 = vld [vmem:[#allocation2 + $0x24] sm:$0x1]  ;;  %1023 = vst [vmem:[#allocation2 + $0x48] sm:$0xf] %v1022_v24  ;;  %v1015_v30 = vsel %vm5148_vm7, %v899_v52, %v1014_v46  ;;  %v919_v31 = vshrl.u32 %v4346_v21, 16  ;;  %v4347_v32 = vpack.c.bf16 %v614_v22, %v614_v22 }
 0x11b   : > { %v1119_v29 = vld [vmem:[#allocation2 + $0x38] sm:$0x1]  ;;  %1090 = vst [vmem:[#allocation2 + $0x30] sm:$0x1] %v1089_v18  ;;  %v1086_v33 = vsel %vm5154_vm8, 0, %v1085_v28  ;;  %v922_v36 = vshll.u32 %v4346_v21, 16  ;;  %v4350_v59 = vpack.c.bf16 %v617_v27, %v617_v27 }
 0x11c   : > { %v1120_v34 = vsel %vm5202_vm10, 0, %v1119_v29  ;;  %1016 = vst [vmem:[#allocation2 + $0x3c] sm:$0xf] %v1015_v30  ;;  %v902_v37 = vshrl.u32 %v4344_v25, 16  ;;  %1087 = vst [vmem:[#allocation2 + $0x24] sm:$0x1] %v1086_v33 }
 0x11d   : > { %v1116_v35 = vld [vmem:[#allocation2 + $0x2c] sm:$0x1]  ;;  %1121 = vst [vmem:[#allocation2 + $0x38] sm:$0x1] %v1120_v34  ;;  %v921_v39 = vrot.slane %v919_v31, 7  ;;  %v905_v41 = vshll.u32 %v4344_v25, 16 }
 0x11e   : > { %v1117_v38 = vsel %vm5202_vm10, 0, %v1116_v35  ;;  %v945_v42 = vshrl.u32 %v4349_v26, 16  ;;  %v904_v44 = vrot.slane %v902_v37, 7  ;;  %v948_v45 = vshll.u32 %v4349_v26, 16  ;;  %v1028_v56 = vld [vmem:[#allocation2 + $0x54] sm:$0xf] }
 0x11f   : > { %1118 = vst [vmem:[#allocation2 + $0x2c] sm:$0x1] %v1117_v38  ;;  %v928_v47 = vshrl.u32 %v4347_v32, 16  ;;  %v931_v48 = vshll.u32 %v4347_v32, 16  ;;  %v924_v49 = vor.u32 %v922_v36, %v921_v39  ;;  %v926_v50 = vrot.slane %v921_v39, 4 }
 0x120   : > { %v5263_v53 = vrot.slane %v945_v42, 7  ;;  %v907_v55 = vor.u32 %v905_v41, %v904_v44  ;;  %v909_v61 = vrot.slane %v904_v44, 4  ;;  %v615_v63 = vmax.f32 %v5247_v12, 0.0  ;;  %v5274_v5 = vld [vmem:[#allocation2] sm:$0xf] }
 0x121   : > { %v5265_v62 = vrot.slane %v928_v47, 7  ;;  %v925_v1 = vsel %vm5160_vm9, %v917_v14, %v924_v49  ;;  %v1026_v2 = vsel %vm5154_vm8, %v926_v50, %v1025_v43  ;;  %v5276_v6 = vld [vmem:[#allocation2 + $0x4] sm:$0xf]  ;;  %v1094_v7 = vld [vmem:[#allocation2 + $0x48] sm:$0x1]  ;;  %v953_v16 = vshrl.u32 %v4350_v59, 16 }
 0x122   : > { %v950_v3 = vor.u32 %v948_v45, %v5263_v53  ;;  %v951_v4 = vrot.slane %v5263_v53, 4  ;;  %1024 = vst.msk [vmem:[#allocation2 + $0x4c] sm:$0xf] %vm764_vm3, %v925_v1  ;;  %1027 = vst [vmem:[#allocation2 + $0x50] sm:$0x1] %v1026_v2  ;;  %v908_v8 = vsel %vm5160_vm9, %v900_v20, %v907_v55  ;;  %v1019_v9 = vsel %vm5154_vm8, %v909_v61, %v1018_v51 }
 0x123   : > { %v933_v11 = vor.u32 %v931_v48, %v5265_v62  ;;  %v934_v12 = vrot.slane %v5265_v62, 4  ;;  %v1155_v13 = vld [vmem:[#allocation2 + $0x8] sm:$0x1]  ;;  %v1095_v14 = vsel %vm5154_vm8, 0, %v1094_v7  ;;  %v1091_v46 = vld [vmem:[#allocation2 + $0x3c] sm:$0x1]  ;;  %v4348_v22 = vpack.c.bf16 %v615_v63, %v615_v63 }
 0x124   : > { %1017 = vst.msk [vmem:[#allocation2 + $0x40] sm:$0xf] %vm764_vm3, %v908_v8  ;;  %1020 = vst [vmem:[#allocation2 + $0x44] sm:$0x1] %v1019_v9  ;;  %v1036_v15 = vsel %vm5148_vm7, %v950_v3, %v1035_v54  ;;  %v956_v52 = vshll.u32 %v4350_v59, 16  ;;  %v1092_v20 = vsel %vm5154_vm8, 0, %v1091_v46 }
 0x125   : > { %1096 = vst [vmem:[#allocation2 + $0x48] sm:$0x1] %v1095_v14  ;;  %1037 = vst [vmem:[#allocation2 + $0x60] sm:$0xf] %v1036_v15  ;;  %v1029_v21 = vsel %vm5148_vm7, %v933_v11, %v1028_v56  ;;  %v1167_v23 = vshrl.u32 %v5274_v5, 16  ;;  %v955_v24 = vrot.slane %v953_v16, 7 }
 0x126   : > { %1093 = vst [vmem:[#allocation2 + $0x3c] sm:$0x1] %v1092_v20  ;;  %1030 = vst [vmem:[#allocation2 + $0x54] sm:$0xf] %v1029_v21  ;;  %v1170_v25 = vshll.u32 %v5274_v5, 16  ;;  %v1176_v26 = vshll.u32 %v5276_v6, 16 }
 0x127   : > { %v1180_v27 = vshrl.u32 %v5276_v6, 16  ;;  %v2135_v18 = vld [vmem:[#allocation2 + $0xc] sm:$0xf]  ;;  %v1039_v28 = vld [vmem:[#allocation2 + $0x68] sm:$0x1]  ;;  %v936_v29 = vshrl.u32 %v4348_v22, 16  ;;  %v958_v33 = vor.u32 %v956_v52, %v955_v24 }
 0x128   : > { %v939_v30 = vshll.u32 %v4348_v22, 16  ;;  %v1169_v31 = vrot.slane %v1167_v23, 4  ;;  %v1186_v32 = vshll.u32 %v1155_v13, 16  ;;  %v960_v34 = vrot.slane %v955_v24, 4  ;;  %v1032_v35 = vld [vmem:[#allocation2 + $0x5c] sm:$0x1] }
 0x129   : > { %v1172_v36 = vrot.slane %v1170_v25, 5  ;;  %v1178_v37 = vrot.slane %v1176_v26, 5  ;;  %v938_v38 = vrot.slane %v936_v29, 7  ;;  %v1182_v39 = vrot.slane %v1180_v27, 4  ;;  %v5298_v42 = vld [vmem:[#allocation2 + $0x10] sm:$0xf] }
 0x12a   : > { %v1188_v41 = vrot.slane %v1186_v32, 5  ;;  %v2160_v43 = vshrl.u32 %v2135_v18, 16  ;;  %v1125_v44 = vld [vmem:[#allocation2 + $0x50] sm:$0x1]  ;;  %v959_v45 = vsel %vm5160_vm9, %v951_v4, %v958_v33  ;;  %v1040_v47 = vsel %vm5154_vm8, %v960_v34, %v1039_v28  ;;  %v5304_v50 = vld [vmem:[#allocation2 + $0xc] sm:$0xf] }
 0x12b   : > { %v1173_v48 = vor.u32 %v1172_v36, %v1169_v31  ;;  %v2163_v49 = vshll.u32 %v2135_v18, 16  ;;  %v1126_v51 = vsel %vm5202_vm10, 0, %v1125_v44  ;;  %v1122_v53 = vld [vmem:[#allocation2 + $0x44] sm:$0x1]  ;;  %1038 = vst.msk [vmem:[#allocation2 + $0x64] sm:$0xf] %vm764_vm3, %v959_v45  ;;  %v941_v54 = vor.u32 %v939_v30, %v938_v38 }
 0x12c   : > { %1041 = vst [vmem:[#allocation2 + $0x68] sm:$0x1] %v1040_v47  ;;  %v943_v59 = vrot.slane %v938_v38, 4  ;;  %v1183_v55 = vor.u32 %v1182_v39, %v1178_v37  ;;  %v5309_v61 = vld [vmem:[#allocation2 + $0x14] sm:$0x1]  ;;  %v1123_v62 = vsel %vm5202_vm10, 0, %v1122_v53 }
 0x12d   : > { %1127 = vst [vmem:[#allocation2 + $0x50] sm:$0x1] %v1126_v51  ;;  %v1100_v56 = vld [vmem:[#allocation2 + $0x60] sm:$0x1]  ;;  %v1174_v63 = vrot.slane %v1173_v48, 4  ;;  %v2162_v1 = vrot.slane %v2160_v43, 4  ;;  %v942_v7 = vsel %vm5160_vm9, %v934_v12, %v941_v54 }
 0x12e   : > { %v2165_v2 = vrot.slane %v2163_v49, 5  ;;  %1124 = vst [vmem:[#allocation2 + $0x44] sm:$0x1] %v1123_v62  ;;  %v1101_v3 = vsel %vm5154_vm8, 0, %v1100_v56  ;;  %v1097_v4 = vld [vmem:[#allocation2 + $0x54] sm:$0x1]  ;;  %v1033_v8 = vsel %vm5154_vm8, %v943_v59, %v1032_v35 }
 0x12f   : > { %v1184_v11 = vrot.slane %v1183_v55, 4  ;;  %1102 = vst [vmem:[#allocation2 + $0x60] sm:$0x1] %v1101_v3  ;;  %v1098_v13 = vsel %vm5154_vm8, 0, %v1097_v4  ;;  %1031 = vst.msk [vmem:[#allocation2 + $0x58] sm:$0xf] %vm764_vm3, %v942_v7  ;;  %v1179_v12 = vsel %vm5321_vm14, %v1174_v63, %v1178_v37 }
 0x130   : > { %1034 = vst [vmem:[#allocation2 + $0x5c] sm:$0x1] %v1033_v8  ;;  %v2166_v14 = vor.u32 %v2165_v2, %v2162_v1  ;;  %v2169_v46 = vshll.u32 %v5298_v42, 16  ;;  %v5331_v15 = vld [vmem:[#allocation2 + $0x10] sm:$0xf]  ;;  %v2173_v52 = vshrl.u32 %v5298_v42, 16 }
 0x131   : > { %1099 = vst [vmem:[#allocation2 + $0x54] sm:$0x1] %v1098_v13  ;;  %v1189_v16 = vsel %vm5321_vm14, %v1184_v11, %v1188_v41  ;;  %v2179_v20 = vshll.u32 %v5309_v61, 16  ;;  %v5337_v21 = vld [vmem:[#allocation2 + $0x14] sm:$0x1]  ;;  %v1191_v22 = vshrl.u32 %v5304_v50, 16 }
 0x132   : > { %v4113_v23 = vcombine.low %v1179_v12, %v1189_v16  ;;  %v2167_v24 = vrot.slane %v2166_v14, 4  ;;  %v2171_v25 = vrot.slane %v2169_v46, 5  ;;  %v1194_v26 = vshll.u32 %v5304_v50, 16  ;;  %v2138_v27 = vld [vmem:[#allocation2 + $0x18] sm:$0xf] }
 0x133   : > { %v2175_v18 = vrot.slane %v2173_v52, 4  ;;  %v2181_v28 = vrot.slane %v2179_v20, 5  ;;  %v1193_v29 = vrot.slane %v1191_v22, 4  ;;  %v1200_v30 = vshll.u32 %v5331_v15, 16  ;;  %v5342_v31 = vld [vmem:[#allocation2 + $0x1c] sm:$0xf] }
 0x134   : > { %v1131_v32 = vld [vmem:[#allocation2 + $0x68] sm:$0x1]  ;;  %4531 = vmatprep.mubr.msk.bf16.mxu0 %vm1391_vm13, %v4113_v23  ;;  %v2172_v33 = vsel %vm5321_vm14, %v2167_v24, %v2171_v25  ;;  %v1196_v34 = vrot.slane %v1194_v26, 5  ;;  %v1204_v35 = vshrl.u32 %v5331_v15, 16  ;;  %v1210_v36 = vshll.u32 %v5337_v21, 16 }
 0x135   : > { %v1132_v37 = vsel %vm5202_vm10, 0, %v1131_v32  ;;  %v2176_v38 = vor.u32 %v2175_v18, %v2171_v25  ;;  %v1202_v39 = vrot.slane %v1200_v30, 5  ;;  %v2184_v41 = vshrl.u32 %v2138_v27, 16  ;;  %v5351_v47 = vld [vmem:[#allocation2 + $0x20] sm:$0x1]  ;;  %v5380_v30 = vld [vmem:[%s6086_s4 + $0x10] sm:$0xff]  }
 0x136   : > { %1133 = vst [vmem:[#allocation2 + $0x68] sm:$0x1] %v1132_v37  ;;  %v1197_v43 = vor.u32 %v1196_v34, %v1193_v29  ;;  %v1206_v44 = vrot.slane %v1204_v35, 4  ;;  %v1212_v45 = vrot.slane %v1210_v36, 5  ;;  %v2187_v48 = vshll.u32 %v2138_v27, 16 }
 0x137   : > { %v1128_v49 = vld [vmem:[#allocation2 + $0x5c] sm:$0x1]  ;;  %v2177_v51 = vrot.slane %v2176_v38, 4  ;;  %v2186_v53 = vrot.slane %v2184_v41, 4  ;;  %v2193_v54 = vshll.u32 %v5342_v31, 16  ;;  %v2197_v59 = vshrl.u32 %v5342_v31, 16 }
 0x138   : > { %v1129_v55 = vsel %vm5202_vm10, 0, %v1128_v49  ;;  %v1198_v62 = vrot.slane %v1197_v43, 4  ;;  %v1207_v56 = vor.u32 %v1206_v44, %v1202_v39  ;;  %v2189_v63 = vrot.slane %v2187_v48, 5  ;;  %v5360_v7 = vld [vmem:[#allocation2 + $0x18] sm:$0xf] }
 0x139   : > { %1130 = vst [vmem:[#allocation2 + $0x5c] sm:$0x1] %v1129_v55  ;;  %v2182_v1 = vsel %vm5321_vm14, %v2177_v51, %v2181_v28  ;;  %v2195_v2 = vrot.slane %v2193_v54, 5  ;;  %v2199_v3 = vrot.slane %v2197_v59, 4  ;;  %v2203_v4 = vshll.u32 %v5351_v47, 16  ;;  %v5396_v51 = vld [vmem:[%s6086_s4 + $0x30] sm:$0xff]  }
 0x13a   : > { %v4195_v8 = vcombine.low %v2172_v33, %v2182_v1  ;;  %v1203_v11 = vsel %vm5321_vm14, %v1198_v62, %v1202_v39  ;;  %v1208_v13 = vrot.slane %v1207_v56, 4  ;;  %v2190_v12 = vor.u32 %v2189_v63, %v2186_v53  ;;  %v5364_v14 = vld [vmem:[#allocation2 + $0x1c] sm:$0xf]  ;;  %v5366_v52 = vld [vmem:[#allocation2 + $0x20] sm:$0x1] }
 0x13b   : > { %v2200_v46 = vor.u32 %v2199_v3, %v2195_v2  ;;  %v2205_v16 = vrot.slane %v2203_v4, 5  ;;  %6108 = vst [vmem:[#allocation4_spill] sm:$0xff] %v5366_v52  ;;  %v1215_v23 = vshrl.u32 %v5360_v7, 16  ;;  %v1218_v24 = vshll.u32 %v5360_v7, 16  ;;  %v2141_v25 = vld [vmem:[#allocation2 + $0x24] sm:$0xf] }
 0x13c   : > { %4603 = vmatprep.mubr.msk.bf16.mxu1 %vm1391_vm13, %v4195_v8  ;;  %v1213_v20 = vsel %vm5321_vm14, %v1208_v13, %v1212_v45  ;;  %v2191_v22 = vrot.slane %v2190_v12, 4  ;;  %v1224_v18 = vshll.u32 %v5364_v14, 16  ;;  %v1228_v28 = vshrl.u32 %v5364_v14, 16  ;;  %v5375_v29 = vld [vmem:[#allocation2 + $0x28] sm:$0xf] }
 0x13d   : > { %v4114_v26 = vcombine.low %v1203_v11, %v1213_v20  ;;  %v2201_v27 = vrot.slane %v2200_v46, 4  ;;  %v1217_v33 = vrot.slane %v1215_v23, 4  ;;  %v1220_v34 = vrot.slane %v1218_v24, 5  ;;  %v5385_v36 = vld [vmem:[#allocation2 + $0x24] sm:$0xf] }
 0x13e   : > { %v2196_v32 = vsel %vm5321_vm14, %v2191_v22, %v2195_v2  ;;  %v1234_v35 = vshll.u32 %v5366_v52, 16  ;;  %v1226_v38 = vrot.slane %v1224_v18, 5  ;;  %v1230_v39 = vrot.slane %v1228_v28, 4  ;;  %v5390_v41 = vld [vmem:[#allocation2 + $0x2c] sm:$0x1] }
 0x13f   : > { %4532 = vmatmul.mubr.msk.bf16.vlgmr.msra.gmra.mrb[16].mxu0 %vm1391_vm13, %v4114_v26  ;;  %v2206_v37 = vsel %vm5321_vm14, %v2201_v27, %v2205_v16  ;;  %v2208_v43 = vshrl.u32 %v2141_v25, 16  ;;  %v1221_v45 = vor.u32 %v1220_v34, %v1217_v33  ;;  %v2211_v49 = vshll.u32 %v2141_v25, 16  ;;  %v5407_v8 = vld [vmem:[#allocation2 + $0x2c] sm:$0x1]  ;;  %v2144_v20 = vld [vmem:[#allocation2 + $0x30] sm:$0xf] }
 0x140   : > { %v4196_v44 = vcombine.low %v2196_v32, %v2206_v37  ;;  %v1236_v48 = vrot.slane %v1234_v35, 5  ;;  %4548 = vmatpush3.bf16.msra.mxu0 %v5136_v19  ;;  %v1231_v53 = vor.u32 %v1230_v39, %v1226_v38  ;;  %v2217_v59 = vshll.u32 %v5375_v29, 16  ;;  %v5403_v19 = vld [vmem:[#allocation2 + $0x28] sm:$0xf]  ;;  %6109 = vst [vmem:[#allocation5_spill] sm:$0xff] %v5407_v8 }
 0x141   : > { %v2210_v54 = vrot.slane %v2208_v43, 4  ;;  %v2221_v55 = vshrl.u32 %v5375_v29, 16  ;;  %4565 = vmatprep.subr.bf16.mxu0 %v5380_v30  ;;  %v1222_v62 = vrot.slane %v1221_v45, 4  ;;  %v2213_v56 = vrot.slane %v2211_v49, 5  ;;  %v5412_v22 = vld [vmem:[#allocation2 + $0x34] sm:$0xf] }
 0x142   : > { %4604 = vmatmul.mubr.msk.bf16.vlgmr.msra.gmra.mrb[8].mxu1 %vm1391_vm13, %v4196_v44  ;;  %v2227_v63 = vshll.u32 %v5390_v41, 16  ;;  %v1239_v1 = vshrl.u32 %v5385_v36, 16  ;;  %v1232_v2 = vrot.slane %v1231_v53, 4  ;;  %v2219_v3 = vrot.slane %v2217_v59, 5  ;;  %v5420_v32 = vld [vmem:[#allocation2 + $0x38] sm:$0x1] }
 0x143   : > { %4620 = vmatpush3.bf16.msra.mxu1 %v5122_v17  ;;  %v2223_v4 = vrot.slane %v2221_v55, 4  ;;  %v1242_v11 = vshll.u32 %v5385_v36, 16  ;;  %v1227_v13 = vsel %vm5321_vm14, %v1222_v62, %v1226_v38  ;;  %v2214_v12 = vor.u32 %v2213_v56, %v2210_v54  ;;  %v5422_v33 = vld [vmem:[#allocation2 + $0x30] sm:$0xf]  ;;  %v5430_v59 = vld [vmem:[#allocation2 + $0x34] sm:$0xf] }
 0x144   : > { %v2229_v46 = vrot.slane %v2227_v63, 5  ;;  %v1241_v16 = vrot.slane %v1239_v1, 4  ;;  %4637 = vmatprep.subr.bf16.mxu1 %v5396_v51  ;;  %v1237_v17 = vsel %vm5321_vm14, %v1232_v2, %v1236_v48  ;;  %v1248_v25 = vshll.u32 %v5403_v19, 16  ;;  %v5433_v1 = vld [vmem:[#allocation2 + $0x38] sm:$0x1] }
 0x145   : > { %v2224_v23 = vor.u32 %v2223_v4, %v2219_v3  ;;  %v1244_v24 = vrot.slane %v1242_v11, 5  ;;  %v4115_v26 = vcombine.low %v1227_v13, %v1237_v17  ;;  %v2215_v27 = vrot.slane %v2214_v12, 4  ;;  %v2147_v13 = vld [vmem:[#allocation2 + $0x3c] sm:$0xf] }
 0x146   : > { %v1252_v18 = vshrl.u32 %v5403_v19, 16  ;;  %v1258_v28 = vshll.u32 %v5407_v8, 16  ;;  %v1250_v37 = vrot.slane %v1248_v25, 5  ;;  %v2232_v38 = vshrl.u32 %v2144_v20, 16 }
 0x147   : > { %v2225_v34 = vrot.slane %v2224_v23, 4  ;;  %v1245_v35 = vor.u32 %v1244_v24, %v1241_v16  ;;  %4535 = vmatprep.mubr.msk.bf16.mxu0 %vm1391_vm13, %v4115_v26  ;;  %v2220_v39 = vsel %vm5321_vm14, %v2215_v27, %v2219_v3  ;;  %v2235_v45 = vshll.u32 %v2144_v20, 16 }
 0x148   : > { %v1254_v43 = vrot.slane %v1252_v18, 4  ;;  %v1260_v44 = vrot.slane %v1258_v28, 5  ;;  %v2234_v53 = vrot.slane %v2232_v38, 4  ;;  %v2241_v54 = vshll.u32 %v5412_v22, 16 }
 0x149   : > { %v2230_v48 = vsel %vm5321_vm14, %v2225_v34, %v2229_v46  ;;  %v1246_v49 = vrot.slane %v1245_v35, 4  ;;  %v2237_v56 = vrot.slane %v2235_v45, 5  ;;  %v2245_v63 = vshrl.u32 %v5412_v22, 16  ;;  %v5445_v34 = vld [vmem:[#allocation2 + $0x40] sm:$0xf] }
 0x14a   : > { %v4197_v55 = vcombine.low %v2220_v39, %v2230_v48  ;;  %v1255_v62 = vor.u32 %v1254_v43, %v1250_v37  ;;  %v2243_v3 = vrot.slane %v2241_v54, 5  ;;  %v2251_v4 = vshll.u32 %v5420_v32, 16  ;;  %v5448_v43 = vld [vmem:[#allocation2 + $0x3c] sm:$0xf] }
 0x14b   : > { %v1251_v2 = vsel %vm5321_vm14, %v1246_v49, %v1250_v37  ;;  %v1263_v11 = vshrl.u32 %v5422_v33, 16  ;;  %v2238_v46 = vor.u32 %v2237_v56, %v2234_v53  ;;  %v2247_v16 = vrot.slane %v2245_v63, 4  ;;  %v5452_v53 = vld [vmem:[#allocation2 + $0x44] sm:$0x1] }
 0x14c   : > { %4607 = vmatprep.mubr.msk.bf16.mxu1 %vm1391_vm13, %v4197_v55  ;;  %v1256_v12 = vrot.slane %v1255_v62, 4  ;;  %v1266_v20 = vshll.u32 %v5422_v33, 16  ;;  %v2253_v17 = vrot.slane %v2251_v4, 5  ;;  %v1272_v24 = vshll.u32 %v5430_v59, 16 }
 0x14d   : > { %v1265_v23 = vrot.slane %v1263_v11, 4  ;;  %v1276_v25 = vshrl.u32 %v5430_v59, 16  ;;  %v2239_v27 = vrot.slane %v2238_v46, 4  ;;  %v2248_v18 = vor.u32 %v2247_v16, %v2243_v3 }
 0x14e   : > { %v1261_v26 = vsel %vm5321_vm14, %v1256_v12, %v1260_v44  ;;  %v1268_v28 = vrot.slane %v1266_v20, 5  ;;  %v1274_v37 = vrot.slane %v1272_v24, 5  ;;  %v1282_v39 = vshll.u32 %v5433_v1, 16 }
 0x14f   : > { %v4116_v35 = vcombine.low %v1251_v2, %v1261_v26  ;;  %v1278_v38 = vrot.slane %v1276_v25, 4  ;;  %v2244_v45 = vsel %vm5321_vm14, %v2239_v27, %v2243_v3  ;;  %v2249_v48 = vrot.slane %v2248_v18, 4  ;;  %v5459_v3 = vld [vmem:[#allocation2 + $0x40] sm:$0xf]  ;;  %v5468_v18 = vld [vmem:[#allocation2 + $0x44] sm:$0x1] }
 0x150   : > { %v1269_v49 = vor.u32 %v1268_v28, %v1265_v23  ;;  %v2256_v44 = vshrl.u32 %v2147_v13, 16  ;;  %v1284_v55 = vrot.slane %v1282_v39, 5  ;;  %v2259_v62 = vshll.u32 %v2147_v13, 16  ;;  %v2150_v23 = vld [vmem:[#allocation2 + $0x48] sm:$0xf]  ;;  %6110 = vst [vmem:[#allocation6_spill] sm:$0xff] %v5468_v18 }
 0x151   : > { %4536 = vmatmul.mubr.msk.bf16.gmra.mrb[20].mxu0 %vm1391_vm13, %v4116_v35  ;;  %v1279_v54 = vor.u32 %v1278_v38, %v1274_v37  ;;  %v2265_v56 = vshll.u32 %v5445_v34, 16  ;;  %v2254_v63 = vsel %vm5321_vm14, %v2249_v48, %v2253_v17  ;;  %v2269_v11 = vshrl.u32 %v5445_v34, 16  ;;  %v5472_v48 = vld [vmem:[#allocation2 + $0x4c] sm:$0xf] }
 0x152   : > { %v1270_v2 = vrot.slane %v1269_v49, 4  ;;  %v2258_v4 = vrot.slane %v2256_v44, 4  ;;  %v4198_v12 = vcombine.low %v2244_v45, %v2254_v63  ;;  %v2261_v16 = vrot.slane %v2259_v62, 5 }
 0x153   : > { %v1280_v46 = vrot.slane %v1279_v54, 4  ;;  %v2267_v20 = vrot.slane %v2265_v56, 5  ;;  %v2271_v13 = vrot.slane %v2269_v11, 4  ;;  %v2275_v25 = vshll.u32 %v5452_v53, 16  ;;  %v5475_v56 = vld [vmem:[#allocation2 + $0x50] sm:$0x1] }
 0x154   : > { %v1275_v24 = vsel %vm5321_vm14, %v1270_v2, %v1274_v37  ;;  %v1287_v26 = vshrl.u32 %v5448_v43, 16  ;;  %4608 = vmatmul.mubr.msk.bf16.gmra.mrb[12].mxu1 %vm1391_vm13, %v4198_v12  ;;  %v2262_v27 = vor.u32 %v2261_v16, %v2258_v4  ;;  %v1290_v28 = vshll.u32 %v5448_v43, 16  ;;  %v5479_v11 = vld [vmem:[#allocation2 + $0x48] sm:$0xf] }
 0x155   : > { %v1285_v17 = vsel %vm5321_vm14, %v1280_v46, %v1284_v55  ;;  %v1296_v35 = vshll.u32 %v5459_v3, 16  ;;  %v2272_v39 = vor.u32 %v2271_v13, %v2267_v20  ;;  %v2277_v37 = vrot.slane %v2275_v25, 5 }
 0x156   : > { %v4117_v38 = vcombine.low %v1275_v24, %v1285_v17  ;;  %v1289_v45 = vrot.slane %v1287_v26, 4  ;;  %v2263_v49 = vrot.slane %v2262_v27, 4  ;;  %v1292_v44 = vrot.slane %v1290_v28, 5  ;;  %v5486_v27 = vld [vmem:[#allocation2 + $0x4c] sm:$0xf] }
 0x157   : > { %v1298_v54 = vrot.slane %v1296_v35, 5  ;;  %v1300_v62 = vshrl.u32 %v5459_v3, 16  ;;  %v2273_v55 = vrot.slane %v2272_v39, 4  ;;  %v1306_v63 = vshll.u32 %v5468_v18, 16  ;;  %v5488_v39 = vld [vmem:[#allocation2 + $0x50] sm:$0x1] }
 0x158   : > { %4539 = vmatprep.mubr.msk.bf16.mxu0 %vm1391_vm13, %v4117_v38  ;;  %v2280_v2 = vshrl.u32 %v2150_v23, 16  ;;  %v2283_v4 = vshll.u32 %v2150_v23, 16  ;;  %v2268_v12 = vsel %vm5321_vm14, %v2263_v49, %v2267_v20  ;;  %v1293_v46 = vor.u32 %v1292_v44, %v1289_v45  ;;  %6111 = vst [vmem:[#allocation7_spill] sm:$0xff] %v5488_v39 }
 0x159   : > { %v1302_v16 = vrot.slane %v1300_v62, 4  ;;  %v2289_v24 = vshll.u32 %v5472_v48, 16  ;;  %v2278_v13 = vsel %vm5321_vm14, %v2273_v55, %v2277_v37  ;;  %v1308_v25 = vrot.slane %v1306_v63, 5 }
 0x15a   : > { %v2282_v26 = vrot.slane %v2280_v2, 4  ;;  %v2285_v17 = vrot.slane %v2283_v4, 5  ;;  %v4199_v28 = vcombine.low %v2268_v12, %v2278_v13  ;;  %v1294_v35 = vrot.slane %v1293_v46, 4  ;;  %v2153_v46 = vld [vmem:[#allocation2 + $0x54] sm:$0xf] }
 0x15b   : > { %v1303_v23 = vor.u32 %v1302_v16, %v1298_v54  ;;  %v2291_v38 = vrot.slane %v2289_v24, 5  ;;  %v2293_v20 = vshrl.u32 %v5472_v48, 16  ;;  %v2299_v45 = vshll.u32 %v5475_v56, 16 }
 0x15c   : > { %v2286_v8 = vor.u32 %v2285_v17, %v2282_v26  ;;  %v1311_v49 = vshrl.u32 %v5479_v11, 16  ;;  %4611 = vmatprep.mubr.msk.bf16.mxu1 %vm1391_vm13, %v4199_v28  ;;  %v1299_v37 = vsel %vm5321_vm14, %v1294_v35, %v1298_v54  ;;  %v1314_v62 = vshll.u32 %v5479_v11, 16  ;;  %v5501_v17 = vld [vmem:[#allocation2 + $0x58] sm:$0xf] }
 0x15d   : > { %v1304_v44 = vrot.slane %v1303_v23, 4  ;;  %v1320_v55 = vshll.u32 %v5486_v27, 16  ;;  %v2295_v2 = vrot.slane %v2293_v20, 4  ;;  %v2301_v4 = vrot.slane %v2299_v45, 5  ;;  %v5506_v23 = vld [vmem:[#allocation2 + $0x5c] sm:$0x1] }
 0x15e   : > { %v2287_v63 = vrot.slane %v2286_v8, 4  ;;  %v1313_v12 = vrot.slane %v1311_v49, 4  ;;  %v1316_v24 = vrot.slane %v1314_v62, 5  ;;  %v1324_v26 = vshrl.u32 %v5486_v27, 16 }
 0x15f   : > { %v1309_v16 = vsel %vm5321_vm14, %v1304_v44, %v1308_v25  ;;  %v1322_v13 = vrot.slane %v1320_v55, 5  ;;  %v2296_v35 = vor.u32 %v2295_v2, %v2291_v38  ;;  %v1330_v8 = vshll.u32 %v5488_v39, 16  ;;  %v5511_v2 = vld [vmem:[#allocation2 + $0x54] sm:$0xf] }
 0x160   : > { %v4118_v54 = vcombine.low %v1299_v37, %v1309_v16  ;;  %v2292_v28 = vsel %vm5321_vm14, %v2287_v63, %v2291_v38  ;;  %v1317_v20 = vor.u32 %v1316_v24, %v1313_v12  ;;  %v1326_v45 = vrot.slane %v1324_v26, 4 }
 0x161   : > { %v2304_v49 = vshrl.u32 %v2153_v46, 16  ;;  %v2307_v52 = vshll.u32 %v2153_v46, 16  ;;  %v2297_v25 = vrot.slane %v2296_v35, 4  ;;  %v1332_v44 = vrot.slane %v1330_v8, 5 }
 0x162   : > { %4540 = vmatmul.mubr.msk.bf16.gmra.mrb[24].mxu0 %vm1391_vm13, %v4118_v54  ;;  %v2313_v62 = vshll.u32 %v5501_v17, 16  ;;  %v2317_v37 = vshrl.u32 %v5501_v17, 16  ;;  %v1318_v55 = vrot.slane %v1317_v20, 4  ;;  %v1327_v16 = vor.u32 %v1326_v45, %v1322_v13  ;;  %v5516_v54 = vld [vmem:[#allocation2 + $0x58] sm:$0xf] }
 0x163   : > { %v2306_v63 = vrot.slane %v2304_v49, 4  ;;  %v2309_v38 = vrot.slane %v2307_v52, 5  ;;  %v2302_v12 = vsel %vm5321_vm14, %v2297_v25, %v2301_v4  ;;  %v2323_v46 = vshll.u32 %v5506_v23, 16  ;;  %v5520_v52 = vld [vmem:[#allocation2 + $0x5c] sm:$0x1] }
 0x164   : > { %v2315_v24 = vrot.slane %v2313_v62, 5  ;;  %v2319_v26 = vrot.slane %v2317_v37, 4  ;;  %v4200_v35 = vcombine.low %v2292_v28, %v2302_v12  ;;  %v1323_v8 = vsel %vm5321_vm14, %v1318_v55, %v1322_v13  ;;  %6112 = vst [vmem:[#allocation8_spill] sm:$0xff] %v5520_v52  ;;  %v2156_v37 = vld [vmem:[#allocation2 + $0x60] sm:$0xf] }
 0x165   : > { %v1328_v58 = vrot.slane %v1327_v16, 4  ;;  %v2310_v20 = vor.u32 %v2309_v38, %v2306_v63  ;;  %v2325_v49 = vrot.slane %v2323_v46, 5  ;;  %v1335_v39 = vshrl.u32 %v5511_v2, 16  ;;  %v5529_v12 = vld [vmem:[#allocation2 + $0x64] sm:$0xf] }
 0x166   : > { %v2320_v45 = vor.u32 %v2319_v26, %v2315_v24  ;;  %v1338_v4 = vshll.u32 %v5511_v2, 16  ;;  %4612 = vmatmul.mubr.msk.bf16.gmra.mrb[16].mxu1 %vm1391_vm13, %v4200_v35  ;;  %v1344_v28 = vshll.u32 %v5516_v54, 16  ;;  %v1348_v13 = vshrl.u32 %v5516_v54, 16 }
 0x167   : > { %v1333_v25 = vsel %vm5321_vm14, %v1328_v58, %v1332_v44  ;;  %v2311_v62 = vrot.slane %v2310_v20, 4  ;;  %v1337_v63 = vrot.slane %v1335_v39, 4  ;;  %v1354_v18 = vshll.u32 %v5520_v52, 16  ;;  %v5537_v20 = vld [vmem:[#allocation2 + $0x68] sm:$0x1] }
 0x168   : > { %v4119_v55 = vcombine.low %v1323_v8, %v1333_v25  ;;  %v2321_v16 = vrot.slane %v2320_v45, 4  ;;  %v1340_v38 = vrot.slane %v1338_v4, 5  ;;  %v1346_v46 = vrot.slane %v1344_v28, 5 }
 0x169   : > { %v2316_v26 = vsel %vm5321_vm14, %v2311_v62, %v2315_v24  ;;  %v1350_v35 = vrot.slane %v1348_v13, 4  ;;  %v2328_v8 = vshrl.u32 %v2156_v37, 16  ;;  %v2331_v39 = vshll.u32 %v2156_v37, 16 }
 0x16a   : > { %4543 = vmatprep.mubr.msk.bf16.mxu0 %vm1391_vm13, %v4119_v55  ;;  %v2326_v58 = vsel %vm5321_vm14, %v2321_v16, %v2325_v49  ;;  %v1341_v44 = vor.u32 %v1340_v38, %v1337_v63  ;;  %v1356_v25 = vrot.slane %v1354_v18, 5  ;;  %v2337_v24 = vshll.u32 %v5529_v12, 16 }
 0x16b   : > { %v4201_v45 = vcombine.low %v2316_v26, %v2326_v58  ;;  %v1351_v4 = vor.u32 %v1350_v35, %v1346_v46  ;;  %v2330_v28 = vrot.slane %v2328_v8, 4  ;;  %v2333_v13 = vrot.slane %v2331_v39, 5  ;;  %v2521_v26 = vld [vmem:[#allocation2 + $0xc] sm:$0xe] }
 0x16c   : > { %v1342_v62 = vrot.slane %v1341_v44, 4  ;;  %v2341_v52 = vshrl.u32 %v5529_v12, 16  ;;  %v2339_v49 = vrot.slane %v2337_v24, 5  ;;  %v2347_v16 = vshll.u32 %v5537_v20, 16 }
 0x16d   : > { %4615 = vmatprep.mubr.msk.bf16.mxu1 %vm1391_vm13, %v4201_v45  ;;  %v1352_v55 = vrot.slane %v1351_v4, 4  ;;  %v2334_v63 = vor.u32 %v2333_v13, %v2330_v28  ;;  %v2555_v35 = vrot.slane %v5298_v42, 5  ;;  %v2558_v58 = vrot.slane %v5309_v61, 5 }
 0x16e   : > { %v1347_v37 = vsel %vm5321_vm14, %v1342_v62, %v1346_v46  ;;  %v2343_v38 = vrot.slane %v2341_v52, 4  ;;  %v2349_v45 = vrot.slane %v2347_v16, 5  ;;  %v4130_v46 = vcombine.low %v5274_v5, %v5276_v6 }
 0x16f   : > { %v1357_v18 = vsel %vm5321_vm14, %v1352_v55, %v1356_v25  ;;  %v2335_v8 = vrot.slane %v2334_v63, 4  ;;  %v2557_v52 = vrot.slane %v2555_v35, 4  ;;  %v2562_v42 = vrot.slane %v5342_v31, 5  ;;  %v2522_v55 = vld [vmem:[#allocation2 + $0x18] sm:$0xe] }
 0x170   : > { %v4120_v44 = vcombine.low %v1347_v37, %v1357_v18  ;;  %v2344_v39 = vor.u32 %v2343_v38, %v2339_v49  ;;  %v4212_v5 = vrot.slane %v2521_v26, 9  ;;  %v2565_v61 = vrot.slane %v5351_v47, 5  ;;  %v4932_v31 = vld [vmem:[%s6085_s3] ss:$0 sm:$0xff]  ;;  %v2523_v38 = vld [vmem:[#allocation2 + $0x24] sm:$0xe] }
 0x171   : > { %v2340_v4 = vsel %vm5321_vm14, %v2335_v8, %v2339_v49  ;;  %v2559_v6 = vsel %vm5556_vm1, %v2557_v52, %v2558_v58  ;;  %v2569_v49 = vrot.slane %v5375_v29, 5  ;;  %v724_v16 = vadd.f32 %v4932_v31, %v5183_v40  ;;  %v5589_v40 = vld [vmem:[%s6086_s4 + $0x18] sm:$0xff]   ;;  %v2524_v52 = vld [vmem:[#allocation2 + $0x30] sm:$0xe] }
 0x172   : > { %4544 = vmatmul.mubr.msk.bf16.gmra.mrb[28].mxu0 %vm1391_vm13, %v4120_v44  ;;  %v2345_v25 = vrot.slane %v2344_v39, 4  ;;  %v2556_v13 = vsel %vm5556_vm1, %v4212_v5, %v2555_v35  ;;  %v732_v63 = vstv %s5562_s21  ;;  %v2564_v47 = vrot.slane %v2562_v42, 4 }
 0x173   : > { %4549 = vmatprep.mubr.msk.bf16.mxu0 %vm1391_vm13, %v4130_v46  ;;  %v4222_v37 = vcombine.low %v2556_v13, %v2559_v6  ;;  %v2572_v18 = vrot.slane %v5390_v41, 5  ;;  %v730_v26 = vmax.f32 %v724_v16, 0.0  ;;  %v4131_v29 = vcombine.low %v5304_v50, %v5331_v15 }
 0x174   : > { %v2350_v62 = vsel %vm5321_vm14, %v2345_v25, %v2349_v45  ;;  %v4213_v35 = vrot.slane %v2522_v55, 9  ;;  %v4132_v58 = vcombine.low %v5360_v7, %v5364_v14  ;;  %v2566_v44 = vsel %vm5556_vm1, %v2564_v47, %v2565_v61 }
 0x175   : > { %v4202_v28 = vcombine.low %v2340_v4, %v2350_v62  ;;  %v2571_v8 = vrot.slane %v2569_v49, 4  ;;  %v733_v41 = vmul.f32 %v732_v63, %v730_v26  ;;  %v727_v39 = vadd.f32 %v4932_v31, %v5198_v57 }
 0x176   : > { %v4214_v45 = vrot.slane %v2523_v38, 9  ;;  %v2563_v50 = vsel %vm5556_vm1, %v4213_v35, %v2562_v42  ;;  %v2576_v4 = vrot.slane %v5412_v22, 5  ;;  %v5607_v42 = vld [vmem:[%s6086_s4 + $0x38] sm:$0xff]   ;;  %v2579_v62 = vrot.slane %v5420_v32, 5  ;;  %v1069_v32 = vld [vmem:[#allocation2 + $0x6c] sm:$0xf] }
 0x177   : > { %4616 = vmatmul.mubr.msk.bf16.gmra.mrb[20].mxu1 %vm1391_vm13, %v4202_v28  ;;  %v2573_v7 = vsel %vm5556_vm1, %v2571_v8, %v2572_v18  ;;  %v4351_v46 = vpack.c.bf16 %v733_v41, %v733_v41  ;;  %v4223_v25 = vcombine.low %v2563_v50, %v2566_v44  ;;  %v731_v5 = vmax.f32 %v727_v39, 0.0  ;;  %v2525_v28 = vld [vmem:[#allocation2 + $0x3c] sm:$0xe]  ;;  %v1680_v39 = vld [vmem:[#allocation2] sm:$0xe] }
 0x178   : > { %4621 = vmatprep.mubr.msk.bf16.mxu1 %vm1391_vm13, %v4222_v37  ;;  %v2570_v57 = vsel %vm5556_vm1, %v4214_v45, %v2569_v49  ;;  %v2583_v22 = vrot.slane %v5445_v34, 5  ;;  %v4133_v13 = vcombine.low %v5385_v36, %v5403_v19  ;;  %v4215_v55 = vrot.slane %v2524_v52, 9 }
 0x179   : > { %v1049_v6 = vshrl.u32 %v4351_v46, 16  ;;  %v1052_v61 = vshll.u32 %v4351_v46, 16  ;;  %v734_v49 = vmul.f32 %v732_v63, %v731_v5  ;;  %v2578_v16 = vrot.slane %v2576_v4, 4  ;;  %v2526_v63 = vld [vmem:[#allocation2 + $0x48] sm:$0xe] }
 0x17a   : > { %4550 = vmatmul.mubr.msk.bf16.vlgmr.msra.gmra.mrb[16].mxu0 %vm1391_vm13, %v4131_v29  ;;  %v4134_v37 = vcombine.low %v5422_v33, %v5430_v59  ;;  %v2586_v47 = vrot.slane %v5452_v53, 5  ;;  %v2577_v34 = vsel %vm5556_vm1, %v4215_v55, %v2576_v4  ;;  %v4216_v36 = vrot.slane %v2525_v28, 9  ;;  %v2527_v46 = vld [vmem:[#allocation2 + $0x54] sm:$0xe]  ;;  %v1073_v4 = vld [vmem:[#allocation2 + $0x74] sm:$0x1] }
 0x17b   : > { %4553 = vmatprep.mubr.msk.bf16.mxu0 %vm1391_vm13, %v4132_v58  ;;  %4566 = vmatpush3.bf16.msra.mxu0 %v5380_v30  ;;  %v4224_v30 = vcombine.low %v2570_v57, %v2573_v7  ;;  %v1051_v31 = vrot.slane %v1049_v6, 7  ;;  %v4352_v38 = vpack.c.bf16 %v734_v49, %v734_v49  ;;  %v2590_v18 = vrot.slane %v5472_v48, 5 }
 0x17c   : > { %4583 = vmatprep.subr.bf16.mxu0 %v5589_v40  ;;  %v2580_v29 = vsel %vm5556_vm1, %v2578_v16, %v2579_v62  ;;  %v2585_v33 = vrot.slane %v2583_v22, 4  ;;  %v2597_v53 = vrot.slane %v5501_v17, 5  ;;  %v4135_v58 = vcombine.low %v5448_v43, %v5459_v3  ;;  %v4933_v43 = vld [vmem:[#allocation2 + $0x4] sm:$0xf]  ;;  %v2528_v62 = vld [vmem:[#allocation2 + $0x60] sm:$0xe] }
 0x17d   : > { %v1054_v26 = vor.u32 %v1052_v61, %v1051_v31  ;;  %v1060_v35 = vshll.u32 %v4352_v38, 16  ;;  %v2593_v44 = vrot.slane %v5475_v56, 5  ;;  %v4217_v17 = vrot.slane %v2526_v63, 9 }
 0x17e   : > { %v2587_v8 = vsel %vm5556_vm1, %v2585_v33, %v2586_v47  ;;  %v2600_v41 = vrot.slane %v5506_v23, 5  ;;  %v1055_v45 = vrot.slane %v1051_v31, 4  ;;  %v2592_v7 = vrot.slane %v2590_v18, 4  ;;  %v4934_v31 = vld [vmem:[#allocation2 + $0x8] sm:$0x1] }
 0x17f   : > { %4622 = vmatmul.mubr.msk.bf16.vlgmr.msra.gmra.mrb[8].mxu1 %vm1391_vm13, %v4223_v25  ;;  %v1070_v48 = vsel %vm5148_vm7, %v1054_v26, %v1069_v32  ;;  %v1709_v52 = vrot.slane %v4933_v43, 5  ;;  %v4225_v56 = vcombine.low %v2577_v34, %v2580_v29  ;;  %v2584_v60 = vsel %vm5556_vm1, %v4216_v36, %v2583_v22  ;;  %v1684_v33 = vld [vmem:[#allocation2 + $0x30] sm:$0xe] }
 0x180   : > { %4638 = vmatpush3.bf16.msra.mxu1 %v5396_v51  ;;  %4625 = vmatprep.mubr.msk.bf16.mxu1 %vm1391_vm13, %v4224_v30  ;;  %v1057_v51 = vshrl.u32 %v4352_v38, 16  ;;  %1071 = vst [vmem:[#allocation2 + $0x6c] sm:$0xf] %v1070_v48  ;;  %v2599_v25 = vrot.slane %v2597_v53, 4  ;;  %v2604_v57 = vrot.slane %v5529_v12, 5  ;;  %v4226_v5 = vcombine.low %v2584_v60, %v2587_v8 }
 0x181   : > { %4655 = vmatprep.subr.bf16.mxu1 %v5607_v42  ;;  %v2594_v23 = vsel %vm5556_vm1, %v2592_v7, %v2593_v44  ;;  %v4218_v28 = vrot.slane %v2527_v46, 9  ;;  %v4147_v22 = vrot.slane %v1680_v39, 9  ;;  %v1711_v49 = vrot.slane %v1709_v52, 4  ;;  %v5661_v38 = vld [vmem:[#allocation2 + $0xc] sm:$0xe] }
 0x182   : > { %4554 = vmatmul.mubr.msk.bf16.gmra.mrb[20].mxu0 %vm1391_vm13, %v4133_v13  ;;  %v1059_v50 = vrot.slane %v1057_v51, 7  ;;  %v2601_v30 = vsel %vm5556_vm1, %v2599_v25, %v2600_v41  ;;  %v2607_v13 = vrot.slane %v5537_v20, 5  ;;  %v1712_v16 = vrot.slane %v4934_v31, 5  ;;  %v1686_v46 = vld [vmem:[#allocation2 + $0x48] sm:$0xe] }
 0x183   : > { %4557 = vmatprep.mubr.msk.bf16.mxu0 %vm1391_vm13, %v4134_v37  ;;  %v2591_v37 = vsel %vm5556_vm1, %v4217_v17, %v2590_v18  ;;  %v4136_v20 = vcombine.low %v5479_v11, %v5486_v27  ;;  %v4219_v47 = vrot.slane %v2528_v62, 9  ;;  %v2606_v32 = vrot.slane %v2604_v57, 4 }
 0x184   : > { %v1062_v6 = vor.u32 %v1060_v35, %v1059_v50  ;;  %v1064_v61 = vrot.slane %v1059_v50, 4  ;;  %v4227_v10 = vcombine.low %v2591_v37, %v2594_v23  ;;  %v2598_v34 = vsel %vm5556_vm1, %v4218_v28, %v2597_v53 }
 0x185   : > { %v4137_v36 = vcombine.low %v5511_v2, %v5516_v54  ;;  %v4228_v18 = vcombine.low %v2598_v34, %v2601_v30  ;;  %v2605_v11 = vsel %vm5556_vm1, %v4219_v47, %v2604_v57  ;;  %v2608_v26 = vsel %vm5556_vm1, %v2606_v32, %v2607_v13  ;;  %v1682_v30 = vld [vmem:[#allocation2 + $0x18] sm:$0xe] }
 0x186   : > { %v1063_v12 = vsel %vm5160_vm9, %v1055_v45, %v1062_v6  ;;  %v1074_v55 = vsel %vm5154_vm8, %v1064_v61, %v1073_v4  ;;  %v1710_v29 = vsel %vm5556_vm1, %v4147_v22, %v1709_v52  ;;  %v1713_v2 = vsel %vm5556_vm1, %v1711_v49, %v1712_v16  ;;  %v6115_v45 = vld [vmem:[#allocation6_spill] sm:$0xff]  ;;  %v6118_v6 = vld [vmem:[#allocation4_spill] sm:$0xff]  ;;  %v4903_v34 = vld [vmem:[#allocation2 + $0x18] sm:$0xff]  }
 0x187   : > { %4626 = vmatmul.mubr.msk.bf16.gmra.mrb[12].mxu1 %vm1391_vm13, %v4225_v56  ;;  %1072 = vst.msk [vmem:[#allocation2 + $0x70] sm:$0xf] %vm764_vm3, %v1063_v12  ;;  %1075 = vst [vmem:[#allocation2 + $0x74] sm:$0x1] %v1074_v55  ;;  %v1103_v63 = vld [vmem:[#allocation2 + $0x6c] sm:$0x1]  ;;  %v4229_v49 = vcombine.low %v2605_v11, %v2608_v26 }
 0x188   : > { %4629 = vmatprep.mubr.msk.bf16.mxu1 %vm1391_vm13, %v4226_v5  ;;  %v1104_v53 = vsel %vm5154_vm8, 0, %v1103_v63  ;;  %v1737_v51 = vrot.slane %v5430_v59, 5  ;;  %v1740_v35 = vrot.slane %v5433_v1, 5  ;;  %v4148_v44 = vrot.slane %v5661_v38, 9  ;;  %v1687_v56 = vld [vmem:[#allocation2 + $0x54] sm:$0xe] }
 0x189   : > { %1105 = vst [vmem:[#allocation2 + $0x6c] sm:$0x1] %v1104_v53  ;;  %v1716_v48 = vrot.slane %v5331_v15, 5  ;;  %v1719_v8 = vrot.slane %v5337_v21, 5  ;;  %v1744_v17 = vrot.slane %v5459_v3, 5  ;;  %v1723_v0 = vrot.slane %v5364_v14, 5 }
 0x18a   : > { %4558 = vmatmul.mubr.msk.bf16.gmra.mrb[24].mxu0 %vm1391_vm13, %v4135_v58  ;;  %v1685_v58 = vld [vmem:[#allocation2 + $0x3c] sm:$0xe]  ;;  %v4151_v41 = vrot.slane %v1684_v33, 9  ;;  %v1739_v39 = vrot.slane %v1737_v51, 4  ;;  %v1747_v50 = vrot.slane %v6115_v45, 5  ;;  %v4157_v59 = vcombine.low %v1710_v29, %v1713_v2  ;;  %v6119_v12 = vld [vmem:[#allocation8_spill] sm:$0xff] }
 0x18b   : > { %4561 = vmatprep.mubr.msk.bf16.mxu0 %vm1391_vm13, %v4136_v20  ;;  %v4152_v1 = vrot.slane %v1685_v58, 9  ;;  %v1746_v7 = vrot.slane %v1744_v17, 4  ;;  %v1751_v43 = vrot.slane %v5486_v27, 5  ;;  %v6116_v14 = vld [vmem:[#allocation7_spill] sm:$0xff]  ;;  %v1758_v60 = vrot.slane %v5516_v54, 5  ;;  %v6120_v53 = vld [vmem:[#allocation5_spill] sm:$0xff] }
 0x18c   : > { %v5687_v15 = vsel %vm5556_vm1, %v4151_v41, %v1737_v51  ;;  %v1741_v21 = vsel %vm5556_vm1, %v1739_v39, %v1740_v35  ;;  %v1754_v3 = vrot.slane %v6116_v14, 5  ;;  %v1726_v61 = vrot.slane %v6118_v6, 5  ;;  %v1683_v51 = vld [vmem:[#allocation2 + $0x24] sm:$0xe]  ;;  %v5757_v41 = vld [vmem:[#allocation2 + $0x1c] sm:$0xf] }
 0x18d   : > { %v4161_v27 = vcombine.low %v5687_v15, %v1741_v21  ;;  %v5698_v57 = vsel %vm5556_vm1, %v4152_v1, %v1744_v17  ;;  %v5702_v5 = vsel %vm5556_vm1, %v1746_v7, %v1747_v50  ;;  %v4153_v23 = vrot.slane %v1686_v46, 9  ;;  %v4906_v58 = vld [vmem:[#allocation2 + $0x24] sm:$0xff]   ;;  %v2982_v17 = vld [vmem:[#allocation2 + $0x18] sm:$0xf]  ;;  %v4908_v7 = vld [vmem:[#allocation2 + $0x3c] sm:$0xff]  }
 0x18e   : > { %v1134_v52 = vld [vmem:[#allocation2 + $0x74] sm:$0x1]  ;;  %v4162_v54 = vcombine.low %v5698_v57, %v5702_v5  ;;  %v1753_v62 = vrot.slane %v1751_v43, 4  ;;  %v1718_v28 = vrot.slane %v1716_v48, 4  ;;  %v4154_v13 = vrot.slane %v1687_v56, 9 }
 0x18f   : > { %4630 = vmatmul.mubr.msk.bf16.gmra.mrb[16].mxu1 %vm1391_vm13, %v4227_v10  ;;  %v1135_v25 = vsel %vm5202_vm10, 0, %v1134_v52  ;;  %v1760_v22 = vrot.slane %v1758_v60, 4  ;;  %v1761_v55 = vrot.slane %v6119_v12, 5  ;;  %v1725_v31 = vrot.slane %v1723_v0, 4  ;;  %v2985_v1 = vld [vmem:[#allocation2 + $0x24] sm:$0xf] }
 0x190   : > { %4633 = vmatprep.mubr.msk.bf16.mxu1 %vm1391_vm13, %v4228_v18  ;;  %1136 = vst [vmem:[#allocation2 + $0x74] sm:$0x1] %v1135_v25  ;;  %v5712_v16 = vsel %vm5556_vm1, %v4153_v23, %v1751_v43  ;;  %v5716_v37 = vsel %vm5556_vm1, %v1753_v62, %v1754_v3  ;;  %v1720_v20 = vsel %vm5556_vm1, %v1718_v28, %v1719_v8  ;;  %v1730_v11 = vrot.slane %v5403_v19, 5  ;;  %v4907_v8 = vld [vmem:[#allocation2 + $0x30] sm:$0xff]   ;;  %v4909_v43 = vld [vmem:[#allocation2 + $0x48] sm:$0xff]  }
 0x191   : > { %v4163_v47 = vcombine.low %v5712_v16, %v5716_v37  ;;  %v5724_v32 = vsel %vm5556_vm1, %v4154_v13, %v1758_v60  ;;  %v5728_v10 = vsel %vm5556_vm1, %v1760_v22, %v1761_v55  ;;  %v1727_v38 = vsel %vm5556_vm1, %v1725_v31, %v1726_v61  ;;  %v5765_v52 = vld [vmem:[#allocation2 + $0x28] sm:$0xf]  ;;  %v2988_v14 = vld [vmem:[#allocation2 + $0x30] sm:$0xf]  ;;  %v5770_v60 = vld [vmem:[#allocation2 + $0x20] sm:$0x1] }
 0x192   : > { %4562 = vmatmul.mubr.msk.bf16.gmra.mrb[28].mxu0 %vm1391_vm13, %v4137_v36  ;;  %v4149_v36 = vrot.slane %v1682_v30, 9  ;;  %v4164_v63 = vcombine.low %v5724_v32, %v5728_v10  ;;  %v1717_v18 = vsel %vm5556_vm1, %v4148_v44, %v1716_v48  ;;  %v1733_v2 = vrot.slane %v6120_v53, 5  ;;  %v5750_v48 = vld [vmem:[%s6086_s4 + $0x40] sm:$0xff]   ;;  %v5772_v25 = vld [vmem:[#allocation2 + $0x2c] sm:$0x1]  ;;  %v4910_v13 = vld [vmem:[#allocation2 + $0x54] sm:$0xff]  }
 0x193   : > { %4567 = vmatprep.mubr.msk.bf16.mxu0 %vm1391_vm13, %v4157_v59  ;;  %v4158_v26 = vcombine.low %v1717_v18, %v1720_v20  ;;  %v1732_v35 = vrot.slane %v1730_v11, 4  ;;  %v4150_v44 = vrot.slane %v1683_v51, 9  ;;  %v3007_v39 = vshrl.u32 %v2982_v17, 16  ;;  %v5780_v61 = vld [vmem:[#allocation2 + $0x34] sm:$0xf]  ;;  %v4911_v22 = vld [vmem:[#allocation2 + $0x60] sm:$0xff]  }
 0x194   : > { %v1724_v29 = vsel %vm5556_vm1, %v4149_v36, %v1723_v0  ;;  %v3010_v45 = vshll.u32 %v2982_v17, 16  ;;  %v3016_v50 = vshll.u32 %v5757_v41, 16  ;;  %v3020_v59 = vshrl.u32 %v5757_v41, 16  ;;  %v2991_v31 = vld [vmem:[#allocation2 + $0x3c] sm:$0xf]  ;;  %v4913_v36 = vld [vmem:[#allocation2 + $0xc] sm:$0xff]  }
 0x195   : > { %v4159_v33 = vcombine.low %v1724_v29, %v1727_v38  ;;  %v1734_v19 = vsel %vm5556_vm1, %v1732_v35, %v1733_v2  ;;  %v1731_v0 = vsel %vm5556_vm1, %v4150_v44, %v1730_v11  ;;  %v3031_v15 = vshrl.u32 %v2985_v1, 16  ;;  %v5791_v18 = vld [vmem:[#allocation2 + $0x38] sm:$0x1]  ;;  %v5794_v29 = vld [vmem:[#allocation2 + $0x40] sm:$0xf] }
 0x196   : > { %v3012_v46 = vrot.slane %v3010_v45, 5  ;;  %v3034_v21 = vshll.u32 %v2985_v1, 16  ;;  %v5768_v3 = vrot.slane %v3016_v50, 5  ;;  %v3022_v56 = vrot.slane %v3020_v59, 4  ;;  %v5798_v35 = vld [vmem:[#allocation2 + $0x4c] sm:$0xf] }
 0x197   : > { %4634 = vmatmul.mubr.msk.bf16.gmra.mrb[20].mxu1 %vm1391_vm13, %v4229_v49  ;;  %v3044_v6 = vshrl.u32 %v5765_v52, 16  ;;  %v3055_v23 = vshrl.u32 %v2988_v14, 16  ;;  %v3058_v62 = vshll.u32 %v2988_v14, 16  ;;  %v3033_v28 = vrot.slane %v3031_v15, 4  ;;  %v4912_v1 = vld [vmem:[#allocation2 + $0x6c] sm:$0xff]  }
 0x198   : > { %4639 = vmatprep.mubr.msk.bf16.mxu1 %vm1391_vm13, %v4903_v34  ;;  %v3036_v30 = vrot.slane %v3034_v21, 5  ;;  %v3023_v12 = vor.u32 %v3022_v56, %v5768_v3  ;;  %v3026_v57 = vshll.u32 %v5770_v60, 16  ;;  %v3064_v55 = vshll.u32 %v5780_v61, 16  ;;  %v2994_v34 = vld [vmem:[#allocation2 + $0x48] sm:$0xf]  ;;  %v4916_v56 = vld [vmem:[#allocation2 + $0x18] sm:$0xff]  }
 0x199   : > { %v3068_v49 = vshrl.u32 %v5780_v61, 16  ;;  %v3046_v37 = vrot.slane %v3044_v6, 4  ;;  %v3057_v20 = vrot.slane %v3055_v23, 4  ;;  %v3082_v53 = vshll.u32 %v2991_v31, 16  ;;  %v5821_v6 = vld [vmem:[#allocation2 + $0x44] sm:$0x1] }
 0x19a   : > { %4568 = vmatmul.mubr.msk.bf16.vlgmr.msra.gmra.mrb[16].mxu0 %vm1391_vm13, %v4158_v26  ;;  %v3037_v38 = vor.u32 %v3036_v30, %v3033_v28  ;;  %v3024_v11 = vrot.slane %v3023_v12, 4  ;;  %v3028_v26 = vrot.slane %v3026_v57, 5  ;;  %v5796_v2 = vrot.slane %v3064_v55, 5  ;;  %v3000_v57 = vld [vmem:[#allocation2 + $0x60] sm:$0xf] }
 0x19b   : > { %4571 = vmatprep.mubr.msk.bf16.mxu0 %vm1391_vm13, %v4159_v33  ;;  %4584 = vmatpush3.bf16.msra.mxu0 %v5589_v40  ;;  %v4160_v40 = vcombine.low %v1731_v0, %v1734_v19  ;;  %v3079_v33 = vshrl.u32 %v2991_v31, 16  ;;  %v3070_v51 = vrot.slane %v3068_v49, 4  ;;  %v3106_v44 = vshll.u32 %v2994_v34, 16  ;;  %v5832_v49 = vld [vmem:[#allocation2 + $0x58] sm:$0xf] }
 0x19c   : > { %v3088_v45 = vshll.u32 %v5794_v29, 16  ;;  %v3092_v50 = vshrl.u32 %v5794_v29, 16  ;;  %v3084_v10 = vrot.slane %v3082_v53, 5  ;;  %v3116_v59 = vshrl.u32 %v5798_v35, 16 }
 0x19d   : > { %v3081_v32 = vrot.slane %v3079_v33, 4  ;;  %v3419_v9 = vrot.slane %v5791_v18, 5 }
 0x19e   : > { %v5823_v23 = vrot.slane %v3088_v45, 5  ;;  %v3118_v12 = vrot.slane %v3116_v59, 4 }
 0x19f   : > { %4640 = vmatmul.mubr.msk.bf16.vlgmr.msra.gmra.mrb[8].mxu1 %vm1391_vm13, %v4906_v58  ;;  %v3103_v58 = vshrl.u32 %v2994_v34, 16  ;;  %v3085_v30 = vor.u32 %v3084_v10, %v3081_v32  ;;  %v3003_v10 = vld [vmem:[#allocation2 + $0x6c] sm:$0xf] }
 0x1a0   : > { %4656 = vmatpush3.bf16.msra.mxu1 %v5607_v42  ;;  %4643 = vmatprep.mubr.msk.bf16.mxu1 %vm1391_vm13, %v4907_v8  ;;  %v3009_v42 = vrot.slane %v3007_v39, 4  ;;  %v3074_v39 = vshll.u32 %v5791_v18, 16 }
 0x1a1   : > { %4673 = vmatprep.subr.bf16.mxu1 %v5750_v48 }
 0x1a2   : > { %4572 = vmatmul.mubr.msk.bf16.gmra.mrb[20].mxu0 %vm1391_vm13, %v4160_v40  ;;  %v3013_v4 = vor.u32 %v3012_v46, %v3009_v42  ;;  %v3038_v40 = vrot.slane %v3037_v38, 4  ;;  %v3071_v42 = vor.u32 %v3070_v51, %v5796_v2  ;;  %v3105_v46 = vrot.slane %v3103_v58, 4  ;;  %v5846_v58 = vld [vmem:[#allocation2 + $0x64] sm:$0xf] }
 0x1a3   : > { %4575 = vmatprep.mubr.msk.bf16.mxu0 %vm1391_vm13, %v4161_v27  ;;  %v3040_v27 = vshll.u32 %v5765_v52, 16  ;;  %v3151_v38 = vshrl.u32 %v3000_v57, 16  ;;  %v3136_v51 = vshll.u32 %v5832_v49, 16  ;;  %v3164_v32 = vshrl.u32 %v5846_v58, 16 }
 0x1a4   : > { %v3014_v5 = vrot.slane %v3013_v4, 4 }
 0x1a5   : > { %v5788_v16 = vrot.slane %v3040_v27, 5  ;;  %v3076_v27 = vrot.slane %v3074_v39, 5  ;;  %v3153_v39 = vrot.slane %v3151_v38, 4 }
 0x1a6   : > { %v3019_v19 = vsel %vm5321_vm14, %v3014_v5, %v5768_v3  ;;  %v2997_v3 = vld [vmem:[#allocation2 + $0x54] sm:$0xf]  ;;  %v4917_v5 = vld [vmem:[#allocation2 + $0x24] sm:$0xff]  }
 0x1a7   : > { %4644 = vmatmul.mubr.msk.bf16.gmra.mrb[12].mxu1 %vm1391_vm13, %v4908_v7  ;;  %v3047_v8 = vor.u32 %v3046_v37, %v5788_v16  ;;  %v3029_v7 = vsel %vm5321_vm14, %v3024_v11, %v3028_v26  ;;  %v3043_v4 = vsel %vm5321_vm14, %v3038_v40, %v5788_v16  ;;  %v3127_v31 = vshrl.u32 %v2997_v3, 16  ;;  %v5849_v40 = vld [vmem:[#allocation2 + $0x70] sm:$0xf] }
 0x1a8   : > { %4647 = vmatprep.mubr.msk.bf16.mxu1 %vm1391_vm13, %v4909_v43  ;;  %v3108_v43 = vrot.slane %v3106_v44, 5  ;;  %v4260_v15 = vcombine.low %v3019_v19, %v3029_v7  ;;  %v3130_v16 = vshll.u32 %v2997_v3, 16  ;;  %v3154_v11 = vshll.u32 %v3000_v57, 16  ;;  %v5865_v3 = vld [vmem:[#allocation2 + $0x68] sm:$0x1] }
 0x1a9   : > { %v3048_v21 = vrot.slane %v3047_v8, 4  ;;  %v3086_v26 = vrot.slane %v3085_v30, 4  ;;  %v3129_v44 = vrot.slane %v3127_v31, 4  ;;  %v3140_v8 = vshrl.u32 %v5832_v49, 16 }
 0x1aa   : > { %4576 = vmatmul.mubr.msk.bf16.gmra.mrb[24].mxu0 %vm1391_vm13, %v4162_v54  ;;  %v3050_v54 = vshll.u32 %v5772_v25, 16  ;;  %v3109_v55 = vor.u32 %v3108_v43, %v3105_v46  ;;  %v3132_v19 = vrot.slane %v3130_v16, 5  ;;  %v3156_v45 = vrot.slane %v3154_v11, 5  ;;  %v4919_v46 = vld [vmem:[#allocation2 + $0x3c] sm:$0xff]   ;;  %v5877_v11 = vld [vmem:[#allocation2 + $0x74] sm:$0x1] }
 0x1ab   : > { %4579 = vmatprep.mubr.msk.bf16.mxu0 %vm1391_vm13, %v4163_v47  ;;  %v3060_v47 = vrot.slane %v3058_v62, 5  ;;  %v3094_v62 = vrot.slane %v3092_v50, 4  ;;  %v3160_v50 = vshll.u32 %v5846_v58, 16  ;;  %v3091_v59 = vsel %vm5321_vm14, %v3086_v26, %v5823_v23  ;;  %v4920_v26 = vld [vmem:[#allocation2 + $0x48] sm:$0xff]  }
 0x1ac   : > { %v3052_v17 = vrot.slane %v3050_v54, 5  ;;  %v3072_v54 = vrot.slane %v3071_v42, 4  ;;  %v3138_v42 = vrot.slane %v3136_v51, 5  ;;  %v3170_v16 = vshll.u32 %v5865_v3, 16  ;;  %v4921_v51 = vld [vmem:[#allocation2 + $0x54] sm:$0xff]  }
 0x1ad   : > { %v3061_v0 = vor.u32 %v3060_v47, %v3057_v20  ;;  %v3098_v47 = vshll.u32 %v5821_v6, 16  ;;  %v3162_v30 = vrot.slane %v3160_v50, 5 }
 0x1ae   : > { %v3053_v28 = vsel %vm5321_vm14, %v3048_v21, %v3052_v17  ;;  %v3077_v34 = vsel %vm5321_vm14, %v3072_v54, %v3076_v27  ;;  %v5862_v21 = vld [vmem:[#allocation2 + $0x5c] sm:$0x1]  ;;  %v3184_v27 = vshll.u32 %v5849_v40, 16 }
 0x1af   : > { %4648 = vmatmul.mubr.msk.bf16.gmra.mrb[16].mxu1 %vm1391_vm13, %v4910_v13  ;;  %v3062_v14 = vrot.slane %v3061_v0, 4  ;;  %v5828_v13 = vld [vmem:[#allocation2 + $0x50] sm:$0x1]  ;;  %v4261_v37 = vcombine.low %v3043_v4, %v3053_v28  ;;  %v3100_v0 = vrot.slane %v3098_v47, 5  ;;  %v3178_v4 = vshll.u32 %v3003_v10, 16 }
 0x1b0   : > { %4651 = vmatprep.mubr.msk.bf16.mxu1 %vm1391_vm13, %v4911_v22  ;;  %v3122_v53 = vshll.u32 %v5828_v13, 16  ;;  %v3157_v28 = vor.u32 %v3156_v45, %v3153_v39  ;;  %v3186_v47 = vrot.slane %v3184_v27, 5 }
 0x1b1   : > { %v3067_v20 = vsel %vm5321_vm14, %v3062_v14, %v5796_v2  ;;  %v3110_v2 = vrot.slane %v3109_v55, 4  ;;  %v3133_v14 = vor.u32 %v3132_v19, %v3129_v44 }
 0x1b2   : > { %4580 = vmatmul.mubr.msk.bf16.gmra.mrb[28].mxu0 %vm1391_vm13, %v4164_v63  ;;  %v3112_v63 = vshll.u32 %v5798_v35, 16  ;;  %v4262_v17 = vcombine.low %v3067_v20, %v3077_v34  ;;  %v3124_v7 = vrot.slane %v3122_v53, 5  ;;  %v3180_v20 = vrot.slane %v3178_v4, 5 }
 0x1b3   : > { %4585 = vmatprep.mubr.msk.bf16.mxu0 %vm1391_vm13, %v4913_v36  ;;  %v3095_v36 = vor.u32 %v3094_v62, %v5823_v23  ;;  %v3188_v23 = vshrl.u32 %v5849_v40, 16  ;;  %v3134_v55 = vrot.slane %v3133_v14, 4  ;;  %v3409_v4 = vrot.slane %v5765_v52, 5 }
 0x1b4   : > { %v5830_v22 = vrot.slane %v3112_v63, 5  ;;  %v4918_v63 = vld [vmem:[#allocation2 + $0x30] sm:$0xff]  }
 0x1b5   : > { %v3190_v34 = vrot.slane %v3188_v23, 4  ;;  %v3139_v53 = vsel %vm5321_vm14, %v3134_v55, %v3138_v42  ;;  %v3416_v23 = vrot.slane %v5780_v61, 5  ;;  %v3423_v55 = vrot.slane %v5794_v29, 5 }
 0x1b6   : > { %v3119_v33 = vor.u32 %v3118_v12, %v5830_v22  ;;  %v3115_v43 = vsel %vm5321_vm14, %v3110_v2, %v5830_v22  ;;  %v3166_v22 = vrot.slane %v3164_v32, 4  ;;  %v3172_v2 = vrot.slane %v3170_v16, 5 }
 0x1b7   : > { %4652 = vmatmul.mubr.msk.bf16.gmra.mrb[20].mxu1 %vm1391_vm13, %v4912_v1  ;;  %v3096_v1 = vrot.slane %v3095_v36, 4  ;;  %v3158_v36 = vrot.slane %v3157_v28, 4  ;;  %v3412_v28 = vrot.slane %v5772_v25, 5  ;;  %v3430_v16 = vrot.slane %v5798_v35, 5 }
 0x1b8   : > { %4657 = vmatprep.mubr.msk.bf16.mxu1 %vm1391_vm13, %v4260_v15  ;;  %v3120_v15 = vrot.slane %v3119_v33, 4  ;;  %v3167_v38 = vor.u32 %v3166_v22, %v3162_v30  ;;  %v3411_v22 = vrot.slane %v3409_v4, 4 }
 0x1b9   : > { %v3101_v62 = vsel %vm5321_vm14, %v3096_v1, %v3100_v0  ;;  %v3163_v0 = vsel %vm5321_vm14, %v3158_v36, %v3162_v30  ;;  %v3369_v30 = vld [vmem:[#allocation2 + $0x24] sm:$0xe]  ;;  %v3425_v36 = vrot.slane %v3423_v55, 4 }
 0x1ba   : > { %4586 = vmatmul.mubr.msk.bf16.vlgmr.msra.gmra.mrb[16].mxu0 %vm1391_vm13, %v4916_v56  ;;  %v3175_v56 = vshrl.u32 %v3003_v10, 16  ;;  %v4263_v12 = vcombine.low %v3091_v59, %v3101_v62  ;;  %v3125_v57 = vsel %vm5321_vm14, %v3120_v15, %v3124_v7  ;;  %v3168_v39 = vrot.slane %v3167_v38, 4  ;;  %v3372_v38 = vld [vmem:[#allocation2 + $0x48] sm:$0xe] }
 0x1bb   : > { %4589 = vmatprep.mubr.msk.bf16.mxu0 %vm1391_vm13, %v4917_v5  ;;  %v3146_v5 = vshll.u32 %v5862_v21, 16  ;;  %v4264_v54 = vcombine.low %v3115_v43, %v3125_v57  ;;  %v3402_v10 = vrot.slane %v5757_v41, 5  ;;  %v3368_v43 = vld [vmem:[#allocation2 + $0x18] sm:$0xe]  ;;  %v3418_v57 = vrot.slane %v3416_v23, 4 }
 0x1bc   : > { %v3173_v32 = vsel %vm5321_vm14, %v3168_v39, %v3172_v2  ;;  %v4278_v52 = vrot.slane %v3369_v30, 9 }
 0x1bd   : > { %v3148_v33 = vrot.slane %v3146_v5, 5  ;;  %v3404_v15 = vrot.slane %v3402_v10, 4  ;;  %v3413_v5 = vsel %vm5556_vm1, %v3411_v22, %v3412_v28  ;;  %v3420_v61 = vsel %vm5556_vm1, %v3418_v57, %v3419_v9 }
 0x1be   : > { %v3410_v25 = vsel %vm5556_vm1, %v4278_v52, %v3409_v4 }
 0x1bf   : > { %4658 = vmatmul.mubr.msk.bf16.vlgmr.msra.gmra.mrb[8].mxu1 %vm1391_vm13, %v4261_v37  ;;  %v3177_v37 = vrot.slane %v3175_v56, 4 }
 0x1c0   : > { %4674 = vmatpush3.bf16.msra.mxu1 %v5750_v48  ;;  %4661 = vmatprep.mubr.msk.bf16.mxu1 %vm1391_vm13, %v4262_v17  ;;  %v3142_v48 = vrot.slane %v3140_v8, 4  ;;  %v3191_v8 = vor.u32 %v3190_v34, %v3186_v47  ;;  %v3194_v17 = vshll.u32 %v5877_v11, 16  ;;  %v3433_v34 = vrot.slane %v5828_v13, 5 }
 0x1c1   : > { %v3181_v19 = vor.u32 %v3180_v20, %v3177_v37  ;;  %v3426_v20 = vrot.slane %v5821_v6, 5 }
 0x1c2   : > { %4590 = vmatmul.mubr.msk.bf16.gmra.mrb[20].mxu0 %vm1391_vm13, %v4918_v63  ;;  %v3143_v31 = vor.u32 %v3142_v48, %v3138_v42  ;;  %v4266_v63 = vcombine.low %v3163_v0, %v3173_v32  ;;  %v3192_v1 = vrot.slane %v3191_v8, 4  ;;  %v3196_v7 = vrot.slane %v3194_v17, 5  ;;  %v3373_v17 = vld [vmem:[#allocation2 + $0x54] sm:$0xe] }
 0x1c3   : > { %4593 = vmatprep.mubr.msk.bf16.mxu0 %vm1391_vm13, %v4919_v46  ;;  %v3182_v59 = vrot.slane %v3181_v19, 4  ;;  %v3405_v42 = vrot.slane %v5770_v60, 5  ;;  %v4922_v46 = vld [vmem:[#allocation2 + $0x60] sm:$0xff]   ;;  %v4277_v48 = vrot.slane %v3368_v43, 9  ;;  %v3440_v8 = vrot.slane %v5862_v21, 5 }
 0x1c4   : > { %v3144_v44 = vrot.slane %v3143_v31, 4  ;;  %v3197_v41 = vsel %vm5321_vm14, %v3192_v1, %v3196_v7  ;;  %v4288_v31 = vcombine.low %v3410_v25, %v3413_v5  ;;  %v3447_v0 = vrot.slane %v5865_v3, 5 }
 0x1c5   : > { %v3187_v14 = vsel %vm5321_vm14, %v3182_v59, %v3186_v47  ;;  %v3406_v56 = vsel %vm5556_vm1, %v3404_v15, %v3405_v42  ;;  %v3403_v27 = vsel %vm5556_vm1, %v4277_v48, %v3402_v10  ;;  %v3371_v47 = vld [vmem:[#allocation2 + $0x3c] sm:$0xe]  ;;  %v3451_v10 = vrot.slane %v5849_v40, 5 }
 0x1c6   : > { %v3149_v45 = vsel %vm5321_vm14, %v3144_v44, %v3148_v33  ;;  %v4267_v60 = vcombine.low %v3187_v14, %v3197_v41  ;;  %v4287_v62 = vcombine.low %v3403_v27, %v3406_v56  ;;  %v4280_v29 = vrot.slane %v3371_v47, 9  ;;  %v4923_v41 = vld [vmem:[%s6088_s6] sm:$0xff]  }
 0x1c7   : > { %4662 = vmatmul.mubr.msk.bf16.gmra.mrb[12].mxu1 %vm1391_vm13, %v4263_v12  ;;  %v4265_v50 = vcombine.low %v3139_v53, %v3149_v45  ;;  %v3370_v12 = vld [vmem:[#allocation2 + $0x30] sm:$0xe]  ;;  %v3427_v33 = vsel %vm5556_vm1, %v3425_v36, %v3426_v20  ;;  %v4281_v53 = vrot.slane %v3372_v38, 9  ;;  %v3444_v44 = vrot.slane %v5846_v58, 5  ;;  %v3374_v45 = vld [vmem:[#allocation2 + $0x60] sm:$0xe]  ;;  %4691 = vmatprep.subr.bf16.mxu0 %v4923_v41 }
 0x1c8   : > { %4665 = vmatprep.mubr.msk.bf16.mxu1 %vm1391_vm13, %v4264_v54  ;;  %v4279_v54 = vrot.slane %v3370_v12, 9  ;;  %v3424_v6 = vsel %vm5556_vm1, %v4280_v29, %v3423_v55  ;;  %v4283_v58 = vrot.slane %v3374_v45, 9  ;;  %v3454_v43 = vrot.slane %v5877_v11, 5  ;;  %4692 = vmatpush3.bf16.msra.mxu0 %v4923_v41 }
 0x1c9   : > { %v4290_v2 = vcombine.low %v3424_v6, %v3427_v33  ;;  %v3431_v13 = vsel %vm5556_vm1, %v4281_v53, %v3430_v16 }
 0x1ca   : > { %4594 = vmatmul.mubr.msk.bf16.gmra.mrb[24].mxu0 %vm1391_vm13, %v4920_v26  ;;  %v3417_v18 = vsel %vm5556_vm1, %v4279_v54, %v3416_v23  ;;  %v3432_v26 = vrot.slane %v3430_v16, 4  ;;  %v3445_v1 = vsel %vm5556_vm1, %v4283_v58, %v3444_v44  ;;  %v5969_v54 = vld [vmem:[%s6087_s5] ss:$0 sm:$0xff] }
 0x1cb   : > { %4597 = vmatprep.mubr.msk.bf16.mxu0 %vm1391_vm13, %v4921_v51  ;;  %v4289_v37 = vcombine.low %v3417_v18, %v3420_v61  ;;  %v3437_v51 = vrot.slane %v5832_v49, 5  ;;  %v4282_v49 = vrot.slane %v3373_v17, 9 }
 0x1cc   : > { %v3434_v35 = vsel %vm5556_vm1, %v3432_v26, %v3433_v34 }
 0x1cd   : > { %v4291_v19 = vcombine.low %v3431_v13, %v3434_v35  ;;  %v3439_v39 = vrot.slane %v3437_v51, 4  ;;  %v3438_v59 = vsel %vm5556_vm1, %v4282_v49, %v3437_v51 }
 0x1cf   : > { %4666 = vmatmul.mubr.msk.bf16.gmra.mrb[16].mxu1 %vm1391_vm13, %v4265_v50  ;;  %v3446_v50 = vrot.slane %v3444_v44, 4  ;;  %v3441_v32 = vsel %vm5556_vm1, %v3439_v39, %v3440_v8 }
 0x1d0   : > { %4669 = vmatprep.mubr.msk.bf16.mxu1 %vm1391_vm13, %v4266_v63  ;;  %v3375_v63 = vld [vmem:[#allocation2 + $0x6c] sm:$0xe]  ;;  %v4292_v3 = vcombine.low %v3438_v59, %v3441_v32 }
 0x1d1   : > { %v3448_v21 = vsel %vm5556_vm1, %v3446_v50, %v3447_v0  ;;  %v4284_v42 = vrot.slane %v3375_v63, 9 }
 0x1d2   : > { %4598 = vmatmul.mubr.msk.bf16.gmra.mrb[28].mxu0 %vm1391_vm13, %v4922_v46  ;;  %v4293_v7 = vcombine.low %v3445_v1, %v3448_v21  ;;  %v3453_v46 = vrot.slane %v3451_v10, 4 }
 0x1d3   : > { %v3452_v40 = vsel %vm5556_vm1, %v4284_v42, %v3451_v10 }
 0x1d4   : > { %v3455_v15 = vsel %vm5556_vm1, %v3453_v46, %v3454_v43 }
 0x1d5   : > { %v4294_v14 = vcombine.low %v3452_v40, %v3455_v15 }
 0x1d7   : > { %4670 = vmatmul.mubr.msk.bf16.gmra.mrb[20].mxu1 %vm1391_vm13, %v4267_v60 }
 0x1d8   : > { %4675 = vmatprep.mubr.msk.bf16.mxu1 %vm1391_vm13, %v4287_v62 }
 0x1df   : > { %4676 = vmatmul.mubr.msk.bf16.vlgmr.msra.gmra.mrb[8].mxu1 %vm1391_vm13, %v4288_v31 }
 0x1e0   : > { %4679 = vmatprep.mubr.msk.bf16.mxu1 %vm1391_vm13, %v4289_v37 }
 0x1e7   : > { %4680 = vmatmul.mubr.msk.bf16.gmra.mrb[12].mxu1 %vm1391_vm13, %v4290_v2 }
 0x1e8   : > { %4683 = vmatprep.mubr.msk.bf16.mxu1 %vm1391_vm13, %v4291_v19 }
 0x1ef   : > { %4684 = vmatmul.mubr.msk.bf16.gmra.mrb[16].mxu1 %vm1391_vm13, %v4292_v3 }
 0x1f0   : > { %4687 = vmatprep.mubr.msk.bf16.mxu1 %vm1391_vm13, %v4293_v7 }
 0x1f7   : > { %4688 = vmatmul.mubr.msk.bf16.gmra.mrb[20].mxu1 %vm1391_vm13, %v4294_v14 }
 0x28d   : > { %v4587_v11 = vpop.f32.mrb[16].mxu0 }
 0x28e   : > { %v2056_v48 = vpop.f32.mrb[17].mxu0 }
 0x28f   : > { %v4588_v56 = vpop.f32.mrb[18].mxu0 }
 0x290   : > { %v2059_v4 = vpop.f32.mrb[19].mxu0 }
 0x295   : > { %v4591_v60 = vpop.f32.mrb[20].mxu0 }
 0x296   : > { %v2072_v27 = vpop.f32.mrb[21].mxu0 }
 0x297   : > { %v4592_v23 = vpop.f32.mrb[22].mxu0 }
 0x298   : > { %v2075_v62 = vpop.f32.mrb[23].mxu0 }
 0x29d   : > { %v4595_v28 = vpop.f32.mrb[24].mxu0 }
 0x29e   : > { %v2088_v24 = vpop.f32.mrb[25].mxu0 }
 0x29f   : > { %v4596_v30 = vpop.f32.mrb[26].mxu0 }
 0x2a0   : > { %v2091_v9 = vpop.f32.mrb[27].mxu0 }
 0x2a5   : > { %v5958_v22 = vpop.f32.mrb[28].mxu0 }
 0x2a6   : > { %v5960_v12 = vpop.f32.mrb[29].mxu0 }
 0x2a7   : > { %v5962_v57 = vpop.f32.mrb[30].mxu0 }
 0x2a8   : > { %v5964_v52 = vpop.f32.mrb[31].mxu0 }
 0x2b2   : > { %v4677_v5 = vpop.f32.mrb[8].mxu1 }
 0x2b3   : > { %v4709_v61 = vadd.f32 %v4677_v5, %v4587_v11  ;;  %v3547_v25 = vpop.f32.mrb[9].mxu1 }
 0x2b4   : > { %v4710_v55 = vadd.f32 %v3547_v25, %v2056_v48  ;;  %v4678_v31 = vpop.f32.mrb[10].mxu1 }
 0x2b5   : > { %v3635_v18 = vadd.f32 %v4709_v61, %v5969_v54  ;;  %v4711_v16 = vadd.f32 %v4678_v31, %v4588_v56  ;;  %v3550_v37 = vpop.f32.mrb[11].mxu1 }
 0x2b6   : > { %v3633_v20 = vadd.f32 %v4710_v55, %v5969_v54  ;;  %v4712_v47 = vadd.f32 %v3550_v37, %v2059_v4 }
 0x2b7   : > { %v3636_v34 = vadd.f32 %v4711_v16, %v5969_v54  ;;  %v3651_v38 = vmax.f32 %v3635_v18, 0.0 }
 0x2b8   : > { %v3634_v36 = vadd.f32 %v4712_v47, %v5969_v54  ;;  %v3649_v29 = vmax.f32 %v3633_v20, 0.0 }
 0x2b9   : > { %v3652_v26 = vmax.f32 %v3636_v34, 0.0  ;;  %v4935_v34 = vld [vmem:[%s5089_s13 + $0x8] sm:$0xff]  }
 0x2ba   : > { %v3650_v33 = vmax.f32 %v3634_v36, 0.0  ;;  %v4681_v53 = vpop.f32.mrb[12].mxu1  ;;  %v3811_v36 = vunpack.c.l.bf16 %v4935_v34 }
 0x2bb   : > { %v3666_v35 = vpack.c.bf16 %v3652_v26, %v3651_v38  ;;  %v4713_v6 = vadd.f32 %v4681_v53, %v4591_v60  ;;  %v3563_v51 = vpop.f32.mrb[13].mxu1  ;;  %v4936_v38 = vld [vmem:[%s5089_s13] sm:$0xff]   ;;  %v3812_v53 = vunpack.c.h.bf16 %v4935_v34 }
 0x2bc   : > { %v3665_v2 = vpack.c.bf16 %v3650_v33, %v3649_v29  ;;  %v4714_v13 = vadd.f32 %v3563_v51, %v2072_v27  ;;  %v4682_v44 = vpop.f32.mrb[14].mxu1 }
 0x2bd   : > { %v3639_v19 = vadd.f32 %v4713_v6, %v5969_v54  ;;  %v4715_v8 = vadd.f32 %v4682_v44, %v4592_v23  ;;  %v3566_v17 = vpop.f32.mrb[15].mxu1 }
 0x2be   : > { %v3637_v0 = vadd.f32 %v4714_v13, %v5969_v54  ;;  %v4716_v39 = vadd.f32 %v3566_v17, %v2075_v62  ;;  %4693 = vmatprep.mubr.msk.bf16.mxu0 %vm1391_vm13, %v3665_v2 }
 0x2bf   : > { %v3640_v45 = vadd.f32 %v4715_v8, %v5969_v54  ;;  %4694 = vmatmul.mubr.msk.bf16.vlgmr.msra.gmra.mrb[32].mxu0 %vm1391_vm13, %v3666_v35  ;;  %v3655_v49 = vmax.f32 %v3639_v19, 0.0  ;;  %v3810_v35 = vunpack.c.h.bf16 %v4936_v38 }
 0x2c0   : > { %v3638_v50 = vadd.f32 %v4716_v39, %v5969_v54  ;;  %v3653_v10 = vmax.f32 %v3637_v0, 0.0 }
 0x2c1   : > { %v3656_v32 = vmax.f32 %v3640_v45, 0.0 }
 0x2c2   : > { %v3654_v58 = vmax.f32 %v3638_v50, 0.0  ;;  %v4685_v21 = vpop.f32.mrb[16].mxu1 }
 0x2c3   : > { %v3668_v63 = vpack.c.bf16 %v3656_v32, %v3655_v49  ;;  %v4717_v59 = vadd.f32 %v4685_v21, %v4595_v28  ;;  %v3579_v3 = vpop.f32.mrb[17].mxu1  ;;  %v4937_v32 = vld [vmem:[%s5089_s13 + $0x18] sm:$0xff]  }
 0x2c4   : > { %v3667_v1 = vpack.c.bf16 %v3654_v58, %v3653_v10  ;;  %v4718_v7 = vadd.f32 %v3579_v3, %v2088_v24  ;;  %v4686_v42 = vpop.f32.mrb[18].mxu1  ;;  %v3815_v10 = vunpack.c.l.bf16 %v4937_v32 }
 0x2c5   : > { %v3643_v46 = vadd.f32 %v4717_v59, %v5969_v54  ;;  %v4719_v43 = vadd.f32 %v4686_v42, %v4596_v30  ;;  %v3582_v40 = vpop.f32.mrb[19].mxu1  ;;  %v4938_v59 = vld [vmem:[%s5089_s13 + $0x10] sm:$0xff]  }
 0x2c6   : > { %v3641_v15 = vadd.f32 %v4718_v7, %v5969_v54  ;;  %v4720_v14 = vadd.f32 %v3582_v40, %v2091_v9  ;;  %4697 = vmatprep.mubr.msk.bf16.mxu0 %vm1391_vm13, %v3667_v1  ;;  %v3813_v3 = vunpack.c.l.bf16 %v4938_v59 }
 0x2c7   : > { %v3644_v41 = vadd.f32 %v4719_v43, %v5969_v54  ;;  %4698 = vmatmul.mubr.msk.bf16.gmra.mrb[36].mxu0 %vm1391_vm13, %v3668_v63  ;;  %v3659_v48 = vmax.f32 %v3643_v46, 0.0  ;;  %v3816_v46 = vunpack.c.h.bf16 %v4937_v32 }
 0x2c8   : > { %v3642_v11 = vadd.f32 %v4720_v14, %v5969_v54  ;;  %v3657_v4 = vmax.f32 %v3641_v15, 0.0  ;;  %v3814_v14 = vunpack.c.h.bf16 %v4938_v59 }
 0x2c9   : > { %v3660_v56 = vmax.f32 %v3644_v41, 0.0 }
 0x2ca   : > { %v3658_v60 = vmax.f32 %v3642_v11, 0.0  ;;  %v4689_v27 = vpop.f32.mrb[20].mxu1 }
 0x2cb   : > { %v3670_v23 = vpack.c.bf16 %v3660_v56, %v3659_v48  ;;  %v4721_v62 = vadd.f32 %v4689_v27, %v5958_v22  ;;  %v3595_v28 = vpop.f32.mrb[21].mxu1 }
 0x2cc   : > { %v3669_v24 = vpack.c.bf16 %v3658_v60, %v3657_v4  ;;  %v4722_v30 = vadd.f32 %v3595_v28, %v5960_v12  ;;  %v4690_v9 = vpop.f32.mrb[22].mxu1 }
 0x2cd   : > { %v3647_v5 = vadd.f32 %v4721_v62, %v5969_v54  ;;  %v4723_v61 = vadd.f32 %v4690_v9, %v5962_v57  ;;  %v3598_v25 = vpop.f32.mrb[23].mxu1 }
 0x2ce   : > { %v3645_v55 = vadd.f32 %v4722_v30, %v5969_v54  ;;  %v4724_v31 = vadd.f32 %v3598_v25, %v5964_v52  ;;  %4701 = vmatprep.mubr.msk.bf16.mxu0 %vm1391_vm13, %v3669_v24  ;;  %v6002_v52 = vld [vmem:[%s6089_s7] ss:$0 sm:$0xff]  ;;  %v4939_v30 = vld [vmem:[%s5089_s13 + $0x28] sm:$0xff]  }
 0x2cf   : > { %v3648_v22 = vadd.f32 %v4723_v61, %v5969_v54  ;;  %4702 = vmatmul.mubr.msk.bf16.gmra.mrb[40].mxu0 %vm1391_vm13, %v3670_v23  ;;  %v3663_v18 = vmax.f32 %v3647_v5, 0.0  ;;  %v3819_v9 = vunpack.c.l.bf16 %v4939_v30 }
 0x2d0   : > { %v3646_v12 = vadd.f32 %v4724_v31, %v5969_v54  ;;  %v3661_v37 = vmax.f32 %v3645_v55, 0.0  ;;  %v3809_v54 = vunpack.c.l.bf16 %v4936_v38  ;;  %v4940_v55 = vld [vmem:[%s5089_s13 + $0x20] sm:$0xff]  }
 0x2d1   : > { %v3664_v16 = vmax.f32 %v3648_v22, 0.0  ;;  %v3817_v31 = vunpack.c.l.bf16 %v4940_v55 }
 0x2d2   : > { %v3662_v20 = vmax.f32 %v3646_v12, 0.0 }
 0x2d3   : > { %v3672_v57 = vpack.c.bf16 %v3664_v16, %v3663_v18  ;;  %v3820_v16 = vunpack.c.h.bf16 %v4939_v30 }
 0x2d4   : > { %v3671_v47 = vpack.c.bf16 %v3662_v20, %v3661_v37 }
 0x2d6   : > { %4705 = vmatprep.mubr.msk.bf16.mxu0 %vm1391_vm13, %v3671_v47  ;;  %v3818_v47 = vunpack.c.h.bf16 %v4940_v55 }
 0x2d7   : > { %4706 = vmatmul.mubr.msk.bf16.gmra.mrb[44].mxu0 %vm1391_vm13, %v3672_v57 }
 0x392   : > { %v4695_v26 = vpop.f32.mrb[32].mxu0 }
 0x393   : > { %v3755_v29 = vadd.f32 %v4695_v26, %v6002_v52  ;;  %v3746_v33 = vpop.f32.mrb[33].mxu0 }
 0x394   : > { %v3747_v6 = vadd.f32 %v6002_v52, %v3746_v33  ;;  %v4696_v51 = vpop.f32.mrb[34].mxu0 }
 0x395   : > { %v3827_v2 = vadd.f32 %v3811_v36, %v3755_v29  ;;  %v3758_v13 = vadd.f32 %v4696_v51, %v6002_v52  ;;  %v3749_v44 = vpop.f32.mrb[35].mxu0 }
 0x396   : > { %v3825_v19 = vadd.f32 %v3809_v54, %v3747_v6  ;;  %v3750_v8 = vadd.f32 %v6002_v52, %v3749_v44 }
 0x397   : > { %v3843_v17 = vmax.f32 %v3827_v2, 0.0  ;;  %v3828_v0 = vadd.f32 %v3812_v53, %v3758_v13  ;;  %v4941_v2 = vld [vmem:[%s5089_s13 + $0x38] sm:$0xff]  }
 0x398   : > { %v3841_v39 = vmax.f32 %v3825_v19, 0.0  ;;  %v3826_v45 = vadd.f32 %v3810_v35, %v3750_v8  ;;  %v3823_v13 = vunpack.c.l.bf16 %v4941_v2 }
 0x399   : > { %v4355_v50 = vpack.c.bf16 %v3843_v17, %v3843_v17  ;;  %v3844_v49 = vmax.f32 %v3828_v0, 0.0  ;;  %v4942_v17 = vld [vmem:[%s5089_s13 + $0x30] sm:$0xff]  }
 0x39a   : > { %v4353_v58 = vpack.c.bf16 %v3841_v39, %v3841_v39  ;;  %v3842_v21 = vmax.f32 %v3826_v45, 0.0  ;;  %v4699_v63 = vpop.f32.mrb[36].mxu0  ;;  %v3821_v0 = vunpack.c.l.bf16 %v4942_v17 }
 0x39b   : > { %3924 = vst.msk [vmem:[%s6015_s25 + $0x8] sm:$0xf] %vm3921_vm2, %v4355_v50  ;;  %v4356_v1 = vpack.c.bf16 %v3844_v49, %v3844_v49  ;;  %v3771_v7 = vadd.f32 %v4699_v63, %v6002_v52  ;;  %v3762_v42 = vpop.f32.mrb[37].mxu0  ;;  %v3824_v49 = vunpack.c.h.bf16 %v4941_v2 }
 0x39c   : > { %3922 = vst.msk [vmem:[%s6015_s25] sm:$0xf] %vm3921_vm2, %v4353_v58  ;;  %v4354_v43 = vpack.c.bf16 %v3842_v21, %v3842_v21  ;;  %v3763_v40 = vadd.f32 %v6002_v52, %v3762_v42  ;;  %v4700_v15 = vpop.f32.mrb[38].mxu0  ;;  %v3822_v21 = vunpack.c.h.bf16 %v4942_v17 }
 0x39d   : > { %3925 = vst.msk [vmem:[%s6015_s25 + $0xc] sm:$0xf] %vm3921_vm2, %v4356_v1  ;;  %v3831_v41 = vadd.f32 %v3815_v10, %v3771_v7  ;;  %v3774_v11 = vadd.f32 %v4700_v15, %v6002_v52  ;;  %v3765_v48 = vpop.f32.mrb[39].mxu0 }
 0x39e   : > { %3923 = vst.msk [vmem:[%s6015_s25 + $0x4] sm:$0xf] %vm3921_vm2, %v4354_v43  ;;  %v3829_v56 = vadd.f32 %v3813_v3, %v3763_v40  ;;  %v3766_v4 = vadd.f32 %v6002_v52, %v3765_v48 }
 0x39f   : > { %v3847_v60 = vmax.f32 %v3831_v41, 0.0  ;;  %v3832_v27 = vadd.f32 %v3816_v46, %v3774_v11 }
 0x3a0   : > { %v3845_v23 = vmax.f32 %v3829_v56, 0.0  ;;  %v3830_v62 = vadd.f32 %v3814_v14, %v3766_v4 }
 0x3a1   : > { %v4359_v28 = vpack.c.bf16 %v3847_v60, %v3847_v60  ;;  %v3848_v24 = vmax.f32 %v3832_v27, 0.0 }
 0x3a2   : > { %v4357_v5 = vpack.c.bf16 %v3845_v23, %v3845_v23  ;;  %v3846_v61 = vmax.f32 %v3830_v62, 0.0  ;;  %v4703_v25 = vpop.f32.mrb[40].mxu0 }
 0x3a3   : > { %3928 = vst.msk [vmem:[%s6015_s25 + $0x18] sm:$0xf] %vm3921_vm2, %v4359_v28  ;;  %v4360_v22 = vpack.c.bf16 %v3848_v24, %v3848_v24  ;;  %v3787_v12 = vadd.f32 %v4703_v25, %v6002_v52  ;;  %v3778_v18 = vpop.f32.mrb[41].mxu0 }
 0x3a4   : > { %3926 = vst.msk [vmem:[%s6015_s25 + $0x10] sm:$0xf] %vm3921_vm2, %v4357_v5  ;;  %v4358_v37 = vpack.c.bf16 %v3846_v61, %v3846_v61  ;;  %v3779_v20 = vadd.f32 %v6002_v52, %v3778_v18  ;;  %v4704_v57 = vpop.f32.mrb[42].mxu0 }
 0x3a5   : > { %3929 = vst.msk [vmem:[%s6015_s25 + $0x1c] sm:$0xf] %vm3921_vm2, %v4360_v22  ;;  %v3835_v34 = vadd.f32 %v3819_v9, %v3787_v12  ;;  %v3790_v36 = vadd.f32 %v4704_v57, %v6002_v52  ;;  %v3781_v38 = vpop.f32.mrb[43].mxu0 }
 0x3a6   : > { %3927 = vst.msk [vmem:[%s6015_s25 + $0x14] sm:$0xf] %vm3921_vm2, %v4358_v37  ;;  %v3833_v54 = vadd.f32 %v3817_v31, %v3779_v20  ;;  %v3782_v26 = vadd.f32 %v6002_v52, %v3781_v38 }
 0x3a7   : > { %v3851_v29 = vmax.f32 %v3835_v34, 0.0  ;;  %v3836_v33 = vadd.f32 %v3820_v16, %v3790_v36 }
 0x3a8   : > { %v3849_v53 = vmax.f32 %v3833_v54, 0.0  ;;  %v3834_v35 = vadd.f32 %v3818_v47, %v3782_v26 }
 0x3a9   : > { %v4363_v6 = vpack.c.bf16 %v3851_v29, %v3851_v29  ;;  %v3852_v51 = vmax.f32 %v3836_v33, 0.0 }
 0x3aa   : > { %v4361_v44 = vpack.c.bf16 %v3849_v53, %v3849_v53  ;;  %v3850_v19 = vmax.f32 %v3834_v35, 0.0  ;;  %v4707_v8 = vpop.f32.mrb[44].mxu0 }
 0x3ab   : > { %3932 = vst.msk [vmem:[%s6015_s25 + $0x28] sm:$0xf] %vm3921_vm2, %v4363_v6  ;;  %v4364_v39 = vpack.c.bf16 %v3852_v51, %v3852_v51  ;;  %v3803_v45 = vadd.f32 %v4707_v8, %v6002_v52  ;;  %v3794_v50 = vpop.f32.mrb[45].mxu0 }
 0x3ac   : > { %3930 = vst.msk [vmem:[%s6015_s25 + $0x20] sm:$0xf] %vm3921_vm2, %v4361_v44  ;;  %v4362_v32 = vpack.c.bf16 %v3850_v19, %v3850_v19  ;;  %v3795_v10 = vadd.f32 %v6002_v52, %v3794_v50  ;;  %v4708_v58 = vpop.f32.mrb[46].mxu0 }
 0x3ad   : > { %3933 = vst.msk [vmem:[%s6015_s25 + $0x2c] sm:$0xf] %vm3921_vm2, %v4364_v39  ;;  %v3839_v63 = vadd.f32 %v3823_v13, %v3803_v45  ;;  %v3806_v59 = vadd.f32 %v4708_v58, %v6002_v52  ;;  %v3797_v3 = vpop.f32.mrb[47].mxu0 }
 0x3ae   : > { %3931 = vst.msk [vmem:[%s6015_s25 + $0x24] sm:$0xf] %vm3921_vm2, %v4362_v32  ;;  %v3837_v1 = vadd.f32 %v3821_v0, %v3795_v10  ;;  %v3798_v7 = vadd.f32 %v6002_v52, %v3797_v3 }
 0x3af   : > { %v3855_v42 = vmax.f32 %v3839_v63, 0.0  ;;  %v3840_v46 = vadd.f32 %v3824_v49, %v3806_v59 }
 0x3b0   : > { %v3853_v43 = vmax.f32 %v3837_v1, 0.0  ;;  %v3838_v40 = vadd.f32 %v3822_v21, %v3798_v7 }
 0x3b1   : > { %v4367_v15 = vpack.c.bf16 %v3855_v42, %v3855_v42  ;;  %v3856_v14 = vmax.f32 %v3840_v46, 0.0 }
 0x3b2   : > { %v4365_v41 = vpack.c.bf16 %v3853_v43, %v3853_v43  ;;  %v3854_v11 = vmax.f32 %v3838_v40, 0.0 }
 0x3b3   : > { %3936 = vst.msk [vmem:[%s6015_s25 + $0x38] sm:$0xf] %vm3921_vm2, %v4367_v15  ;;  %v4368_v48 = vpack.c.bf16 %v3856_v14, %v3856_v14 }
 0x3b4   : > { %3934 = vst.msk [vmem:[%s6015_s25 + $0x30] sm:$0xf] %vm3921_vm2, %v4365_v41  ;;  %v4366_v56 = vpack.c.bf16 %v3854_v11, %v3854_v11 }
 0x3b5   : > { %3937 = vst.msk [vmem:[%s6015_s25 + $0x3c] sm:$0xf] %vm3921_vm2, %v4368_v48 }
 0x3b6   : > { %3935 = vst.msk [vmem:[%s6015_s25 + $0x34] sm:$0xf] %vm3921_vm2, %v4366_v56 }
 0x3b7 PF: > { %s18_s9 = sadd.s32 1, %s4981_s9   ;;  %s6121_s27 = smov %s4973_s29 }
 0x3b8   : > { %p15_p10 = scmp.ge.s32.totalorder %s18_s9, 6   ;;  %s6122_s28 = smov %s4977_s30 }
 0x3b9   : > { %s6123_s29 = smov %s6126_s10  ;;  %s6124_s30 = smov %s6130_s11 }
 0x3ba   :  { %17 = sbr.rel (!%p15_p10) target bundleno = 3 (0x3), region = 97 }

</bundles_post_ra>
